<compile_context>
chip_gen: v6e
topology: v6e:2x2x1
jax: 0.10.0
libtpu: 0.0.40
codegen_flags: <defaults>
</compile_context>

<pallas_src>
import numpy as np
import jax
import jax.numpy as jnp
from jax.experimental import pallas as pl
from jax.experimental.pallas import tpu as pltpu


def _round_up(x, m):
    return (x + m - 1) // m * m


# -----------------------------------------------------------------------------
# Pallas kernel
# -----------------------------------------------------------------------------
def _make_grouped_nll_kernel(seg_left_edge, head_size, n_seg):
    """seg_left_edge[i] = first vocab id of segment i ( [0] + cutoffs[:-1] )."""

    def kernel(tile_seg_ref, hidden_ref, target_ref, *rest):
        nll_ref = rest[-1]
        seg_refs = rest[:-1]                      # (weight, bias+mask) per segment
        seg = tile_seg_ref[pl.program_id(0)]      # this tile's cluster id (SMEM)

        h = hidden_ref[...]                       # [TB, Dp] bf16
        tgt = target_ref[...]                     # [TB, 1]  int32

        def lse_and_gather(si, col):
            """logsumexp over segment si's logits + logit at per-row column col."""
            w_ref = seg_refs[2 * si]              # [Dp, Vp] bf16
            bm_ref = seg_refs[2 * si + 1]         # [1, Vp]  f32 (bias+logmask, pad=-1e30)
            logit = jnp.dot(h, w_ref[...], preferred_element_type=jnp.float32)
            logit = logit + bm_ref[...]           # [TB, Vp] f32
            mx = jnp.max(logit, axis=-1, keepdims=True)
            lse = jnp.log(jnp.sum(jnp.exp(logit - mx), axis=-1, keepdims=True)) + mx
            cols = jax.lax.broadcasted_iota(jnp.int32, logit.shape, 1)
            g = jnp.sum(jnp.where(cols == col, logit, 0.0), axis=-1, keepdims=True)
            return lse, g

        # Head column: the target itself for shortlist tiles, head_size - seg for
        # cluster-`seg` tiles (reproduces the reference's head_logprob[:, -i]
        # reversed-column indexing quirk).
        head_col = jnp.where(seg == 0, tgt, head_size - seg)
        head_lse, head_g = lse_and_gather(0, head_col)
        head_nll = head_lse - head_g              # [TB, 1]

        @pl.when(seg == 0)
        def _():
            nll_ref[...] = head_nll

        for i in range(1, n_seg):
            @pl.when(seg == i)
            def _(i=i):
                # Only this tail's matmul executes for this tile.
                tail_lse, tail_g = lse_and_gather(i, tgt - seg_left_edge[i])
                nll_ref[...] = head_nll + (tail_lse - tail_g)

    return kernel


# -----------------------------------------------------------------------------
# Module wrapper (parameter/buffer setup = glue, hot path = Pallas kernel)
# -----------------------------------------------------------------------------
class ClassedProjectedAdaptiveLogSoftmaxPallas:
    def __init__(self, n_token, d_embed, d_proj, cutoffs,
                 cl_all_root_index, cl_all_leaf_index, key):
        assert d_proj == d_embed, "this config implements d_proj == d_embed (div_val=1)"
        self.n_token = n_token
        self.d_embed = d_embed
        self.d_proj = d_proj
        self.cutoffs = list(cutoffs) + [n_token]
        self.cutoff_ends = [0] + self.cutoffs
        self.shortlist_size = self.cutoffs[0]
        self.n_clusters = len(self.cutoffs) - 1
        self.head_size = self.shortlist_size + self.n_clusters
        self.n_seg = len(self.cutoffs)            # head + tails
        assert self.n_clusters > 0
        self.d_pad = _round_up(d_embed, 128)

        # ---- deterministic parameter init (shapes from module __init__) ----
        k0, k1, k2, k3 = jax.random.split(key, 4)
        weight = jax.random.normal(k0, (n_token, d_embed), jnp.float32) * 0.1
        bias = jax.random.normal(k1, (n_token,), jnp.float32) * 0.1
        cluster_weight = jax.random.normal(k2, (self.n_clusters, d_embed), jnp.float32) * 0.1
        cluster_bias = jax.random.normal(k3, (self.n_clusters,), jnp.float32) * 0.1

        # ---- per-segment padded, lane-dense weights & fused bias+log-mask ----
        # segment 0 = [shortlist | cluster rows]; segments 1.. = tails.
        self.seg_wt_pad = []        # [D_pad, V_pad] bf16
        self.seg_biasmask_pad = []  # [1,    V_pad] f32 (bias + log(remove_root+1e-45), pad=-1e30)
        for i in range(self.n_seg):
            l_idx, r_idx = self.cutoff_ends[i], self.cutoff_ends[i + 1]
            w_i = weight[l_idx:r_idx]
            b_i = bias[l_idx:r_idx]
            if i == 0:
                w_i = jnp.concatenate([w_i, cluster_weight], axis=0)
                b_i = jnp.concatenate([b_i, cluster_bias], axis=0)
            v_i = int(w_i.shape[0])
            v_pad = _round_up(v_i, 128)

            # remove_root_i buffer (predict_root=False path), as log(mask+1e-45)
            mask = np.ones(v_i, dtype=np.float32)
            root_local = [idx - l_idx for idx in cl_all_root_index if l_idx <= idx < r_idx]
            if root_local:
                mask[np.array(root_local)] = 0.0
            log_mask = np.log(mask + np.float32(1e-45)).astype(np.float32)

            bm = np.full((1, v_pad), -1e30, dtype=np.float32)
            bm[0, :v_i] = np.asarray(b_i, np.float32) + log_mask

            w_pad = np.zeros((self.d_pad, v_pad), dtype=np.float32)
            w_pad[:d_embed, :v_i] = np.asarray(w_i, np.float32).T

            self.seg_wt_pad.append(jnp.asarray(w_pad, jnp.bfloat16))
            self.seg_biasmask_pad.append(jnp.asarray(bm, jnp.float32))

        self._kernel = _make_grouped_nll_kernel(
            self.cutoff_ends[:-1], self.head_size, self.n_seg)

    # -------------------------------------------------------------------------
    def _run(self, tile_seg, h_grp, t_grp, num_tiles, tb, single_buffer):
        def resident_spec(shape):
            # Weight / bias+mask blocks never change block index across the row
            # grid -> keep a single resident buffer when the build supports it.
            if single_buffer:
                return pl.BlockSpec(shape, lambda i, ts: (0, 0),
                                    pipeline_mode=pl.Buffered(1))
            return pl.BlockSpec(shape, lambda i, ts: (0, 0))

        in_specs = [
            pl.BlockSpec((tb, self.d_pad), lambda i, ts: (i, 0)),   # hidden tiles
            pl.BlockSpec((tb, 1), lambda i, ts: (i, 0)),            # target tiles
        ]
        args = [h_grp, t_grp]
        resident_bytes = 0
        for w, bm in zip(self.seg_wt_pad, self.seg_biasmask_pad):
            vp = int(w.shape[1])
            in_specs += [resident_spec((self.d_pad, vp)), resident_spec((1, vp))]
            args += [w, bm]
            resident_bytes += self.d_pad * vp * 2 + vp * 4

        # Explicit scoped-VMEM budget (v5e default is only 16 MiB), capped for v7x.
        stream_bytes = 2 * (tb * self.d_pad * 2 + tb * 4 + tb * 4)
        vmem_limit = int(min(64 * 2 ** 20,
                             max(32 * 2 ** 20, 4 * (2 * resident_bytes + stream_bytes))))

        grid_spec = pltpu.PrefetchScalarGridSpec(
            num_scalar_prefetch=1,           # tile_seg: per-tile cluster id (SMEM)
            grid=(num_tiles,),
            in_specs=in_specs,
            out_specs=pl.BlockSpec((tb, 1), lambda i, ts: (i, 0)),
        )
        return pl.pallas_call(
            self._kernel,
            out_shape=jax.ShapeDtypeStruct((num_tiles * tb, 1), jnp.float32),
            grid_spec=grid_spec,
            compiler_params=pltpu.CompilerParams(
                dimension_semantics=("parallel",),   # row tiles split across cores
                vmem_limit_bytes=vmem_limit),
        )(tile_seg, *args)

    # -------------------------------------------------------------------------
    def __call__(self, hidden, target, row_block=256):
        n, d = hidden.shape
        assert d == self.d_proj
        n_seg = self.n_seg

        # Row tile: multiple of 16 (bf16 sublane packing), capped for tiny inputs.
        tb = max(16, min(_round_up(row_block, 16), _round_up(n, 16), 512))
        n_max = _round_up(n, tb) + n_seg * tb        # static upper bound after grouping
        num_tiles = n_max // tb

        target = jnp.asarray(target, jnp.int32)

        # ---- host-side cluster grouping (all static shapes, keep_order) ------
        cl = jnp.zeros((n,), jnp.int32)
        for c in self.cutoffs[:-1]:
            cl = cl + (target >= c).astype(jnp.int32)      # cluster id per row

        counts = jnp.stack([jnp.sum(cl == i).astype(jnp.int32) for i in range(n_seg)])
        padded_counts = ((counts + tb - 1) // tb) * tb
        zero = jnp.zeros((1,), jnp.int32)
        group_start_pad = jnp.concatenate(
            [zero, jnp.cumsum(padded_counts)[:-1]]).astype(jnp.int32)
        group_start = jnp.concatenate(
            [zero, jnp.cumsum(counts)[:-1]]).astype(jnp.int32)

        order = jnp.argsort(cl)                            # group rows by cluster
        sorted_cl = cl[order]
        rank = jnp.arange(n, dtype=jnp.int32) - group_start[sorted_cl]
        dest = group_start_pad[sorted_cl] + rank           # slot in grouped buffer

        hb = jnp.zeros((n, self.d_pad), jnp.bfloat16).at[:, :d].set(
            jnp.asarray(hidden, jnp.bfloat16))
        h_grp = jnp.zeros((n_max, self.d_pad), jnp.bfloat16).at[dest].set(hb[order])
        t_grp = jnp.zeros((n_max, 1), jnp.int32).at[dest].set(target[order][:, None])

        # Per-tile segment id (tiles never straddle groups; unused tiles -> 0).
        tile_start = jnp.arange(num_tiles, dtype=jnp.int32) * tb
        tile_seg = jnp.zeros((num_tiles,), jnp.int32)
        for i in range(1, n_seg):
            in_grp = (tile_start >= group_start_pad[i]) & (
                tile_start < group_start_pad[i] + padded_counts[i])
            tile_seg = jnp.where(in_grp, jnp.int32(i), tile_seg)

        # ---- pallas call ------------------------------------------------------
        try:
            nll_pad = self._run(tile_seg, h_grp, t_grp, num_tiles, tb,
                                single_buffer=True)
        except Exception:
            # pipeline_mode=pl.Buffered(1) not accepted by this build for the
            # top-level pallas_call pipeline -> default double buffering.
            nll_pad = self._run(tile_seg, h_grp, t_grp, num_tiles, tb,
                                single_buffer=False)

        # Scatter back to the original row order (keep_order=True semantics).
        nll_rows = nll_pad[dest, 0]                        # values for rows `order`
        return jnp.zeros((n,), jnp.float32).at[order].set(nll_rows)

    # -------------------------------------------------------------------------
    # numpy reference (mirrors the PyTorch forward, n_clusters > 0 branch),
    # evaluated on the same bf16-rounded hidden/weights the kernel consumes.
    def reference(self, hidden, target):
        h = np.asarray(jnp.asarray(hidden, jnp.bfloat16).astype(jnp.float32), np.float32)
        t = np.asarray(target, np.int64)
        d = self.d_proj
        wts = [np.asarray(w.astype(jnp.float32), np.float32)[:d] for w in self.seg_wt_pad]
        bms = [np.asarray(b, np.float32) for b in self.seg_biasmask_pad]

        def log_softmax(x):
            m = x.max(axis=-1, keepdims=True)
            return x - m - np.log(np.exp(x - m).sum(axis=-1, keepdims=True))

        head_lp = log_softmax(h @ wts[0] + bms[0])    # padded cols are -1e30 -> no effect
        nll = np.zeros(t.shape[0], np.float32)
        cutoff_values = [0] + self.cutoffs
        for i in range(len(cutoff_values) - 1):
            l_idx, r_idx = cutoff_values[i], cutoff_values[i + 1]
            idx = np.nonzero((t >= l_idx) & (t < r_idx))[0]
            if idx.size == 0:
                continue
            t_i = t[idx] - l_idx
            if i == 0:
                nll[idx] = -head_lp[idx, t_i]
            else:
                tail_lp = log_softmax(h[idx] @ wts[i] + bms[i])
                # head_size - i == the reference's head_logprob[:, -i] column
                # (explicit here because the head array is lane-padded).
                nll[idx] = -tail_lp[np.arange(idx.size), t_i] - head_lp[idx, self.head_size - i]
        return nll


# -----------------------------------------------------------------------------
if __name__ == "__main__":
    n_token, d_embed, d_proj = 48, 32, 32
    cutoffs = [16, 32]                        # -> clusters [0,16), [16,32), [32,48)
    cl_all_root_index = [2, 18, 33]
    cl_all_leaf_index = [5, 6, 20, 40]

    key = jax.random.PRNGKey(0)
    kmod, kh, kt = jax.random.split(key, 3)

    mod = ClassedProjectedAdaptiveLogSoftmaxPallas(
        n_token, d_embed, d_proj, cutoffs,
        cl_all_root_index, cl_all_leaf_index, kmod)

    n_rows = 128                              # len * bsz
    hidden = jax.random.normal(kh, (n_rows, d_proj), jnp.float32)
    target = jax.random.randint(kt, (n_rows,), 0, n_token, jnp.int32)

    # row_block=32 -> several row tiles per cluster group at this toy size
    # (exercises grouping, scalar prefetch, and the trailing all-pad tile).
    nll = jax.block_until_ready(mod(hidden, target, row_block=32))
    ref = mod.reference(hidden, target)

    assert nll.shape == (n_rows,)
    assert np.all(np.isfinite(np.asarray(nll)))
    np.testing.assert_allclose(np.asarray(nll), ref, rtol=2e-3, atol=2e-3)
    print("KERNEL_OK")
</pallas_src>

<mosaic_0001>
module attributes {stable_mosaic.version = 11 : i64} {
  func.func @kernel(%arg0: i32, %arg1: memref<7xi32, #tpu.memory_space<smem>>, %arg2: memref<32x128xbf16, #tpu.memory_space<vmem>>, %arg3: memref<32x1xi32, #tpu.memory_space<vmem>>, %arg4: memref<128x128xbf16, #tpu.memory_space<vmem>>, %arg5: memref<1x128xf32, #tpu.memory_space<vmem>>, %arg6: memref<128x128xbf16, #tpu.memory_space<vmem>>, %arg7: memref<1x128xf32, #tpu.memory_space<vmem>>, %arg8: memref<128x128xbf16, #tpu.memory_space<vmem>>, %arg9: memref<1x128xf32, #tpu.memory_space<vmem>>, %arg10: memref<32x1xf32, #tpu.memory_space<vmem>>) attributes {dimension_semantics = [#tpu.dimension_semantics<parallel>], iteration_bounds = array<i64: 7>, scalar_prefetch = 1 : i64, scratch_operands = 0 : i64, tpu.core_type = #tpu.core_type<tc>, window_params = [{transform_indices = @transform_0, window_bounds = array<i64: 32, 128>}, {transform_indices = @transform_1, window_bounds = array<i64: 32, 1>}, {pipeline_mode = #tpu.pipeline_mode<synchronous>, transform_indices = @transform_2, window_bounds = array<i64: 128, 128>}, {pipeline_mode = #tpu.pipeline_mode<synchronous>, transform_indices = @transform_3, window_bounds = array<i64: 1, 128>}, {pipeline_mode = #tpu.pipeline_mode<synchronous>, transform_indices = @transform_4, window_bounds = array<i64: 128, 128>}, {pipeline_mode = #tpu.pipeline_mode<synchronous>, transform_indices = @transform_5, window_bounds = array<i64: 1, 128>}, {pipeline_mode = #tpu.pipeline_mode<synchronous>, transform_indices = @transform_6, window_bounds = array<i64: 128, 128>}, {pipeline_mode = #tpu.pipeline_mode<synchronous>, transform_indices = @transform_7, window_bounds = array<i64: 1, 128>}, {transform_indices = @transform_8, window_bounds = array<i64: 32, 1>}]} {
    %0 = arith.index_cast %arg0 : i32 to index
    %1 = memref.load %arg1[%0] : memref<7xi32, #tpu.memory_space<smem>>
    %c0 = arith.constant 0 : index
    %c0_0 = arith.constant 0 : index
    %2 = vector.load %arg2[%c0, %c0_0] : memref<32x128xbf16, #tpu.memory_space<vmem>>, vector<32x128xbf16>
    %c0_1 = arith.constant 0 : index
    %c0_2 = arith.constant 0 : index
    %3 = vector.load %arg3[%c0_1, %c0_2] : memref<32x1xi32, #tpu.memory_space<vmem>>, vector<32x1xi32>
    %c0_i32 = arith.constant 0 : i32
    %4 = arith.cmpi eq, %1, %c0_i32 : i32
    %c18_i32 = arith.constant 18 : i32
    %5 = arith.subi %c18_i32, %1 : i32
    %6 = vector.broadcast %5 : i32 to vector<32x1xi32>
    %7 = arith.select %4, %3, %6 : vector<32x1xi32>
    %c0_3 = arith.constant 0 : index
    %c0_4 = arith.constant 0 : index
    %8 = vector.load %arg4[%c0_3, %c0_4] : memref<128x128xbf16, #tpu.memory_space<vmem>>, vector<128x128xbf16>
    %cst = arith.constant dense<0.000000e+00> : vector<32x128xf32>
    %9 = tpu.matmul %2, %8, %cst {dimension_numbers = #tpu.dot_dimension_numbers<[1], [0], [0], [1], [0, 0, 1, 1], [], []>} : vector<32x128xbf16>, vector<128x128xbf16>, vector<32x128xf32> -> vector<32x128xf32>
    %c0_5 = arith.constant 0 : index
    %c0_6 = arith.constant 0 : index
    %10 = vector.load %arg5[%c0_5, %c0_6] : memref<1x128xf32, #tpu.memory_space<vmem>>, vector<1x128xf32>
    %11 = vector.broadcast %10 : vector<1x128xf32> to vector<32x128xf32>
    %12 = arith.addf %9, %11 : vector<32x128xf32>
    %cst_7 = arith.constant dense<0xFF800000> : vector<32xf32>
    %13 = vector.multi_reduction <maximumf>, %12, %cst_7 [1] : vector<32x128xf32> to vector<32xf32>
    %14 = vector.shape_cast %13 : vector<32xf32> to vector<32x1xf32>
    %15 = vector.broadcast %14 : vector<32x1xf32> to vector<32x128xf32>
    %16 = arith.subf %12, %15 : vector<32x128xf32>
    %17 = math.exp %16 : vector<32x128xf32>
    %cst_8 = arith.constant dense<0.000000e+00> : vector<32xf32>
    %18 = vector.multi_reduction <add>, %17, %cst_8 [1] : vector<32x128xf32> to vector<32xf32>
    %19 = vector.shape_cast %18 : vector<32xf32> to vector<32x1xf32>
    %20 = math.log %19 : vector<32x1xf32>
    %21 = arith.addf %20, %14 : vector<32x1xf32>
    %22 = tpu.iota {dimensions = array<i32: 1>} : vector<32x128xi32>
    %23 = vector.broadcast %7 : vector<32x1xi32> to vector<32x128xi32>
    %24 = arith.cmpi eq, %22, %23 : vector<32x128xi32>
    %cst_9 = arith.constant 0.000000e+00 : f32
    %25 = vector.broadcast %cst_9 : f32 to vector<32x128xf32>
    %26 = arith.select %24, %12, %25 : vector<32x128xi1>, vector<32x128xf32>
    %cst_10 = arith.constant dense<0.000000e+00> : vector<32xf32>
    %27 = vector.multi_reduction <add>, %26, %cst_10 [1] : vector<32x128xf32> to vector<32xf32>
    %28 = vector.shape_cast %27 : vector<32xf32> to vector<32x1xf32>
    %29 = arith.subf %21, %28 : vector<32x1xf32>
    %c0_i32_11 = arith.constant 0 : i32
    %30 = arith.cmpi eq, %1, %c0_i32_11 : i32
    %31 = arith.extui %30 : i1 to i32
    %c0_i32_12 = arith.constant 0 : i32
    %32 = arith.cmpi ne, %31, %c0_i32_12 : i32
    scf.if %32 {
      %c0_15 = arith.constant 0 : index
      %c0_16 = arith.constant 0 : index
      %39 = vector.load %arg10[%c0_15, %c0_16] : memref<32x1xf32, #tpu.memory_space<vmem>>, vector<32x1xf32>
      tpu.vector_store %arg10[%c0_15, %c0_16], %29 {strides = array<i32>} : memref<32x1xf32, #tpu.memory_space<vmem>>, vector<32x1xf32>,
    } else {
    }
    %c1_i32 = arith.constant 1 : i32
    %33 = arith.cmpi eq, %1, %c1_i32 : i32
    %34 = arith.extui %33 : i1 to i32
    %c0_i32_13 = arith.constant 0 : i32
    %35 = arith.cmpi ne, %34, %c0_i32_13 : i32
    scf.if %35 {
      %c16_i32 = arith.constant 16 : i32
      %39 = vector.broadcast %c16_i32 : i32 to vector<32x1xi32>
      %40 = arith.subi %3, %39 : vector<32x1xi32>
      %c0_15 = arith.constant 0 : index
      %c0_16 = arith.constant 0 : index
      %41 = vector.load %arg6[%c0_15, %c0_16] : memref<128x128xbf16, #tpu.memory_space<vmem>>, vector<128x128xbf16>
      %cst_17 = arith.constant dense<0.000000e+00> : vector<32x128xf32>
      %42 = tpu.matmul %2, %41, %cst_17 {dimension_numbers = #tpu.dot_dimension_numbers<[1], [0], [0], [1], [0, 0, 1, 1], [], []>} : vector<32x128xbf16>, vector<128x128xbf16>, vector<32x128xf32> -> vector<32x128xf32>
      %c0_18 = arith.constant 0 : index
      %c0_19 = arith.constant 0 : index
      %43 = vector.load %arg7[%c0_18, %c0_19] : memref<1x128xf32, #tpu.memory_space<vmem>>, vector<1x128xf32>
      %44 = vector.broadcast %43 : vector<1x128xf32> to vector<32x128xf32>
      %45 = arith.addf %42, %44 : vector<32x128xf32>
      %cst_20 = arith.constant dense<0xFF800000> : vector<32xf32>
      %46 = vector.multi_reduction <maximumf>, %45, %cst_20 [1] : vector<32x128xf32> to vector<32xf32>
      %47 = vector.shape_cast %46 : vector<32xf32> to vector<32x1xf32>
      %48 = vector.broadcast %47 : vector<32x1xf32> to vector<32x128xf32>
      %49 = arith.subf %45, %48 : vector<32x128xf32>
      %50 = math.exp %49 : vector<32x128xf32>
      %cst_21 = arith.constant dense<0.000000e+00> : vector<32xf32>
      %51 = vector.multi_reduction <add>, %50, %cst_21 [1] : vector<32x128xf32> to vector<32xf32>
      %52 = vector.shape_cast %51 : vector<32xf32> to vector<32x1xf32>
      %53 = math.log %52 : vector<32x1xf32>
      %54 = arith.addf %53, %47 : vector<32x1xf32>
      %55 = tpu.iota {dimensions = array<i32: 1>} : vector<32x128xi32>
      %56 = vector.broadcast %40 : vector<32x1xi32> to vector<32x128xi32>
      %57 = arith.cmpi eq, %55, %56 : vector<32x128xi32>
      %cst_22 = arith.constant 0.000000e+00 : f32
      %58 = vector.broadcast %cst_22 : f32 to vector<32x128xf32>
      %59 = arith.select %57, %45, %58 : vector<32x128xi1>, vector<32x128xf32>
      %cst_23 = arith.constant dense<0.000000e+00> : vector<32xf32>
      %60 = vector.multi_reduction <add>, %59, %cst_23 [1] : vector<32x128xf32> to vector<32xf32>
      %61 = vector.shape_cast %60 : vector<32xf32> to vector<32x1xf32>
      %62 = arith.subf %54, %61 : vector<32x1xf32>
      %63 = arith.addf %29, %62 : vector<32x1xf32>
      %c0_24 = arith.constant 0 : index
      %c0_25 = arith.constant 0 : index
      %64 = vector.load %arg10[%c0_24, %c0_25] : memref<32x1xf32, #tpu.memory_space<vmem>>, vector<32x1xf32>
      tpu.vector_store %arg10[%c0_24, %c0_25], %63 {strides = array<i32>} : memref<32x1xf32, #tpu.memory_space<vmem>>, vector<32x1xf32>,
    } else {
    }
    %c2_i32 = arith.constant 2 : i32
    %36 = arith.cmpi eq, %1, %c2_i32 : i32
    %37 = arith.extui %36 : i1 to i32
    %c0_i32_14 = arith.constant 0 : i32
    %38 = arith.cmpi ne, %37, %c0_i32_14 : i32
    scf.if %38 {
      %c32_i32 = arith.constant 32 : i32
      %39 = vector.broadcast %c32_i32 : i32 to vector<32x1xi32>
      %40 = arith.subi %3, %39 : vector<32x1xi32>
      %c0_15 = arith.constant 0 : index
      %c0_16 = arith.constant 0 : index
      %41 = vector.load %arg8[%c0_15, %c0_16] : memref<128x128xbf16, #tpu.memory_space<vmem>>, vector<128x128xbf16>
      %cst_17 = arith.constant dense<0.000000e+00> : vector<32x128xf32>
      %42 = tpu.matmul %2, %41, %cst_17 {dimension_numbers = #tpu.dot_dimension_numbers<[1], [0], [0], [1], [0, 0, 1, 1], [], []>} : vector<32x128xbf16>, vector<128x128xbf16>, vector<32x128xf32> -> vector<32x128xf32>
      %c0_18 = arith.constant 0 : index
      %c0_19 = arith.constant 0 : index
      %43 = vector.load %arg9[%c0_18, %c0_19] : memref<1x128xf32, #tpu.memory_space<vmem>>, vector<1x128xf32>
      %44 = vector.broadcast %43 : vector<1x128xf32> to vector<32x128xf32>
      %45 = arith.addf %42, %44 : vector<32x128xf32>
      %cst_20 = arith.constant dense<0xFF800000> : vector<32xf32>
      %46 = vector.multi_reduction <maximumf>, %45, %cst_20 [1] : vector<32x128xf32> to vector<32xf32>
      %47 = vector.shape_cast %46 : vector<32xf32> to vector<32x1xf32>
      %48 = vector.broadcast %47 : vector<32x1xf32> to vector<32x128xf32>
      %49 = arith.subf %45, %48 : vector<32x128xf32>
      %50 = math.exp %49 : vector<32x128xf32>
      %cst_21 = arith.constant dense<0.000000e+00> : vector<32xf32>
      %51 = vector.multi_reduction <add>, %50, %cst_21 [1] : vector<32x128xf32> to vector<32xf32>
      %52 = vector.shape_cast %51 : vector<32xf32> to vector<32x1xf32>
      %53 = math.log %52 : vector<32x1xf32>
      %54 = arith.addf %53, %47 : vector<32x1xf32>
      %55 = tpu.iota {dimensions = array<i32: 1>} : vector<32x128xi32>
      %56 = vector.broadcast %40 : vector<32x1xi32> to vector<32x128xi32>
      %57 = arith.cmpi eq, %55, %56 : vector<32x128xi32>
      %cst_22 = arith.constant 0.000000e+00 : f32
      %58 = vector.broadcast %cst_22 : f32 to vector<32x128xf32>
      %59 = arith.select %57, %45, %58 : vector<32x128xi1>, vector<32x128xf32>
      %cst_23 = arith.constant dense<0.000000e+00> : vector<32xf32>
      %60 = vector.multi_reduction <add>, %59, %cst_23 [1] : vector<32x128xf32> to vector<32xf32>
      %61 = vector.shape_cast %60 : vector<32xf32> to vector<32x1xf32>
      %62 = arith.subf %54, %61 : vector<32x1xf32>
      %63 = arith.addf %29, %62 : vector<32x1xf32>
      %c0_24 = arith.constant 0 : index
      %c0_25 = arith.constant 0 : index
      %64 = vector.load %arg10[%c0_24, %c0_25] : memref<32x1xf32, #tpu.memory_space<vmem>>, vector<32x1xf32>
      tpu.vector_store %arg10[%c0_24, %c0_25], %63 {strides = array<i32>} : memref<32x1xf32, #tpu.memory_space<vmem>>, vector<32x1xf32>,
    } else {
    }
    return
  }
  func.func @transform_0(%arg0: i32, %arg1: memref<7xi32, #tpu.memory_space<smem>>) -> (i32, i32) {
    %c0_i32 = arith.constant 0 : i32
    %c0_i32_0 = arith.constant 0 : i32
    return %arg0, %c0_i32 : i32, i32
  }
  func.func @transform_1(%arg0: i32, %arg1: memref<7xi32, #tpu.memory_space<smem>>) -> (i32, i32) {
    %c0_i32 = arith.constant 0 : i32
    %c0_i32_0 = arith.constant 0 : i32
    return %arg0, %c0_i32 : i32, i32
  }
  func.func @transform_2(%arg0: i32, %arg1: memref<7xi32, #tpu.memory_space<smem>>) -> (i32, i32) {
    %c0_i32 = arith.constant 0 : i32
    %c0_i32_0 = arith.constant 0 : i32
    %c0_i32_1 = arith.constant 0 : i32
    return %c0_i32, %c0_i32_0 : i32, i32
  }
  func.func @transform_3(%arg0: i32, %arg1: memref<7xi32, #tpu.memory_space<smem>>) -> (i32, i32) {
    %c0_i32 = arith.constant 0 : i32
    %c0_i32_0 = arith.constant 0 : i32
    %c0_i32_1 = arith.constant 0 : i32
    return %c0_i32, %c0_i32_0 : i32, i32
  }
  func.func @transform_4(%arg0: i32, %arg1: memref<7xi32, #tpu.memory_space<smem>>) -> (i32, i32) {
    %c0_i32 = arith.constant 0 : i32
    %c0_i32_0 = arith.constant 0 : i32
    %c0_i32_1 = arith.constant 0 : i32
    return %c0_i32, %c0_i32_0 : i32, i32
  }
  func.func @transform_5(%arg0: i32, %arg1: memref<7xi32, #tpu.memory_space<smem>>) -> (i32, i32) {
    %c0_i32 = arith.constant 0 : i32
    %c0_i32_0 = arith.constant 0 : i32
    %c0_i32_1 = arith.constant 0 : i32
    return %c0_i32, %c0_i32_0 : i32, i32
  }
  func.func @transform_6(%arg0: i32, %arg1: memref<7xi32, #tpu.memory_space<smem>>) -> (i32, i32) {
    %c0_i32 = arith.constant 0 : i32
    %c0_i32_0 = arith.constant 0 : i32
    %c0_i32_1 = arith.constant 0 : i32
    return %c0_i32, %c0_i32_0 : i32, i32
  }
  func.func @transform_7(%arg0: i32, %arg1: memref<7xi32, #tpu.memory_space<smem>>) -> (i32, i32) {
    %c0_i32 = arith.constant 0 : i32
    %c0_i32_0 = arith.constant 0 : i32
    %c0_i32_1 = arith.constant 0 : i32
    return %c0_i32, %c0_i32_0 : i32, i32
  }
  func.func @transform_8(%arg0: i32, %arg1: memref<7xi32, #tpu.memory_space<smem>>) -> (i32, i32) {
    %c0_i32 = arith.constant 0 : i32
    %c0_i32_0 = arith.constant 0 : i32
    return %arg0, %c0_i32 : i32, i32
  }
}

module attributes {stable_mosaic.version = 11 : i64} {
  func.func @kernel(%arg0: i32, %arg1: memref<7xi32, #tpu.memory_space<smem>>, %arg2: memref<32x128xbf16, #tpu.memory_space<vmem>>, %arg3: memref<32x1xi32, #tpu.memory_space<vmem>>, %arg4: memref<128x128xbf16, #tpu.memory_space<vmem>>, %arg5: memref<1x128xf32, #tpu.memory_space<vmem>>, %arg6: memref<128x128xbf16, #tpu.memory_space<vmem>>, %arg7: memref<1x128xf32, #tpu.memory_space<vmem>>, %arg8: memref<128x128xbf16, #tpu.memory_space<vmem>>, %arg9: memref<1x128xf32, #tpu.memory_space<vmem>>, %arg10: memref<32x1xf32, #tpu.memory_space<vmem>>) attributes {dimension_semantics = [#tpu.dimension_semantics<parallel>], iteration_bounds = array<i64: 7>, scalar_prefetch = 1 : i64, scratch_operands = 0 : i64, tpu.core_type = #tpu.core_type<tc>, window_params = [{transform_indices = @transform_0, window_bounds = array<i64: 32, 128>}, {transform_indices = @transform_1, window_bounds = array<i64: 32, 1>}, {pipeline_mode = #tpu.pipeline_mode<synchronous>, transform_indices = @transform_2, window_bounds = array<i64: 128, 128>}, {pipeline_mode = #tpu.pipeline_mode<synchronous>, transform_indices = @transform_3, window_bounds = array<i64: 1, 128>}, {pipeline_mode = #tpu.pipeline_mode<synchronous>, transform_indices = @transform_4, window_bounds = array<i64: 128, 128>}, {pipeline_mode = #tpu.pipeline_mode<synchronous>, transform_indices = @transform_5, window_bounds = array<i64: 1, 128>}, {pipeline_mode = #tpu.pipeline_mode<synchronous>, transform_indices = @transform_6, window_bounds = array<i64: 128, 128>}, {pipeline_mode = #tpu.pipeline_mode<synchronous>, transform_indices = @transform_7, window_bounds = array<i64: 1, 128>}, {transform_indices = @transform_8, window_bounds = array<i64: 32, 1>}]} {
    %0 = arith.index_cast %arg0 : i32 to index
    %1 = memref.load %arg1[%0] : memref<7xi32, #tpu.memory_space<smem>>
    %c0 = arith.constant 0 : index
    %c0_0 = arith.constant 0 : index
    %2 = vector.load %arg2[%c0, %c0_0] : memref<32x128xbf16, #tpu.memory_space<vmem>>, vector<32x128xbf16>
    %c0_1 = arith.constant 0 : index
    %c0_2 = arith.constant 0 : index
    %3 = vector.load %arg3[%c0_1, %c0_2] : memref<32x1xi32, #tpu.memory_space<vmem>>, vector<32x1xi32>
    %c0_i32 = arith.constant 0 : i32
    %4 = arith.cmpi eq, %1, %c0_i32 : i32
    %c18_i32 = arith.constant 18 : i32
    %5 = arith.subi %c18_i32, %1 : i32
    %6 = vector.broadcast %5 : i32 to vector<32x1xi32>
    %7 = arith.select %4, %3, %6 : vector<32x1xi32>
    %c0_3 = arith.constant 0 : index
    %c0_4 = arith.constant 0 : index
    %8 = vector.load %arg4[%c0_3, %c0_4] : memref<128x128xbf16, #tpu.memory_space<vmem>>, vector<128x128xbf16>
    %cst = arith.constant dense<0.000000e+00> : vector<32x128xf32>
    %9 = tpu.matmul %2, %8, %cst {dimension_numbers = #tpu.dot_dimension_numbers<[1], [0], [0], [1], [0, 0, 1, 1], [], []>} : vector<32x128xbf16>, vector<128x128xbf16>, vector<32x128xf32> -> vector<32x128xf32>
    %c0_5 = arith.constant 0 : index
    %c0_6 = arith.constant 0 : index
    %10 = vector.load %arg5[%c0_5, %c0_6] : memref<1x128xf32, #tpu.memory_space<vmem>>, vector<1x128xf32>
    %11 = vector.broadcast %10 : vector<1x128xf32> to vector<32x128xf32>
    %12 = arith.addf %9, %11 : vector<32x128xf32>
    %cst_7 = arith.constant dense<0xFF800000> : vector<32xf32>
    %13 = vector.multi_reduction <maximumf>, %12, %cst_7 [1] : vector<32x128xf32> to vector<32xf32>
    %14 = vector.shape_cast %13 : vector<32xf32> to vector<32x1xf32>
    %15 = vector.broadcast %14 : vector<32x1xf32> to vector<32x128xf32>
    %16 = arith.subf %12, %15 : vector<32x128xf32>
    %17 = math.exp %16 : vector<32x128xf32>
    %cst_8 = arith.constant dense<0.000000e+00> : vector<32xf32>
    %18 = vector.multi_reduction <add>, %17, %cst_8 [1] : vector<32x128xf32> to vector<32xf32>
    %19 = vector.shape_cast %18 : vector<32xf32> to vector<32x1xf32>
    %20 = math.log %19 : vector<32x1xf32>
    %21 = arith.addf %20, %14 : vector<32x1xf32>
    %22 = tpu.iota {dimensions = array<i32: 1>} : vector<32x128xi32>
    %23 = vector.broadcast %7 : vector<32x1xi32> to vector<32x128xi32>
    %24 = arith.cmpi eq, %22, %23 : vector<32x128xi32>
    %cst_9 = arith.constant 0.000000e+00 : f32
    %25 = vector.broadcast %cst_9 : f32 to vector<32x128xf32>
    %26 = arith.select %24, %12, %25 : vector<32x128xi1>, vector<32x128xf32>
    %cst_10 = arith.constant dense<0.000000e+00> : vector<32xf32>
    %27 = vector.multi_reduction <add>, %26, %cst_10 [1] : vector<32x128xf32> to vector<32xf32>
    %28 = vector.shape_cast %27 : vector<32xf32> to vector<32x1xf32>
    %29 = arith.subf %21, %28 : vector<32x1xf32>
    %c0_i32_11 = arith.constant 0 : i32
    %30 = arith.cmpi eq, %1, %c0_i32_11 : i32
    %31 = arith.extui %30 : i1 to i32
    %c0_i32_12 = arith.constant 0 : i32
    %32 = arith.cmpi ne, %31, %c0_i32_12 : i32
    scf.if %32 {
      %c0_15 = arith.constant 0 : index
      %c0_16 = arith.constant 0 : index
      %39 = vector.load %arg10[%c0_15, %c0_16] : memref<32x1xf32, #tpu.memory_space<vmem>>, vector<32x1xf32>
      tpu.vector_store %arg10[%c0_15, %c0_16], %29 {strides = array<i32>} : memref<32x1xf32, #tpu.memory_space<vmem>>, vector<32x1xf32>,
    } else {
    }
    %c1_i32 = arith.constant 1 : i32
    %33 = arith.cmpi eq, %1, %c1_i32 : i32
    %34 = arith.extui %33 : i1 to i32
    %c0_i32_13 = arith.constant 0 : i32
    %35 = arith.cmpi ne, %34, %c0_i32_13 : i32
    scf.if %35 {
      %c16_i32 = arith.constant 16 : i32
      %39 = vector.broadcast %c16_i32 : i32 to vector<32x1xi32>
      %40 = arith.subi %3, %39 : vector<32x1xi32>
      %c0_15 = arith.constant 0 : index
      %c0_16 = arith.constant 0 : index
      %41 = vector.load %arg6[%c0_15, %c0_16] : memref<128x128xbf16, #tpu.memory_space<vmem>>, vector<128x128xbf16>
      %cst_17 = arith.constant dense<0.000000e+00> : vector<32x128xf32>
      %42 = tpu.matmul %2, %41, %cst_17 {dimension_numbers = #tpu.dot_dimension_numbers<[1], [0], [0], [1], [0, 0, 1, 1], [], []>} : vector<32x128xbf16>, vector<128x128xbf16>, vector<32x128xf32> -> vector<32x128xf32>
      %c0_18 = arith.constant 0 : index
      %c0_19 = arith.constant 0 : index
      %43 = vector.load %arg7[%c0_18, %c0_19] : memref<1x128xf32, #tpu.memory_space<vmem>>, vector<1x128xf32>
      %44 = vector.broadcast %43 : vector<1x128xf32> to vector<32x128xf32>
      %45 = arith.addf %42, %44 : vector<32x128xf32>
      %cst_20 = arith.constant dense<0xFF800000> : vector<32xf32>
      %46 = vector.multi_reduction <maximumf>, %45, %cst_20 [1] : vector<32x128xf32> to vector<32xf32>
      %47 = vector.shape_cast %46 : vector<32xf32> to vector<32x1xf32>
      %48 = vector.broadcast %47 : vector<32x1xf32> to vector<32x128xf32>
      %49 = arith.subf %45, %48 : vector<32x128xf32>
      %50 = math.exp %49 : vector<32x128xf32>
      %cst_21 = arith.constant dense<0.000000e+00> : vector<32xf32>
      %51 = vector.multi_reduction <add>, %50, %cst_21 [1] : vector<32x128xf32> to vector<32xf32>
      %52 = vector.shape_cast %51 : vector<32xf32> to vector<32x1xf32>
      %53 = math.log %52 : vector<32x1xf32>
      %54 = arith.addf %53, %47 : vector<32x1xf32>
      %55 = tpu.iota {dimensions = array<i32: 1>} : vector<32x128xi32>
      %56 = vector.broadcast %40 : vector<32x1xi32> to vector<32x128xi32>
      %57 = arith.cmpi eq, %55, %56 : vector<32x128xi32>
      %cst_22 = arith.constant 0.000000e+00 : f32
      %58 = vector.broadcast %cst_22 : f32 to vector<32x128xf32>
      %59 = arith.select %57, %45, %58 : vector<32x128xi1>, vector<32x128xf32>
      %cst_23 = arith.constant dense<0.000000e+00> : vector<32xf32>
      %60 = vector.multi_reduction <add>, %59, %cst_23 [1] : vector<32x128xf32> to vector<32xf32>
      %61 = vector.shape_cast %60 : vector<32xf32> to vector<32x1xf32>
      %62 = arith.subf %54, %61 : vector<32x1xf32>
      %63 = arith.addf %29, %62 : vector<32x1xf32>
      %c0_24 = arith.constant 0 : index
      %c0_25 = arith.constant 0 : index
      %64 = vector.load %arg10[%c0_24, %c0_25] : memref<32x1xf32, #tpu.memory_space<vmem>>, vector<32x1xf32>
      tpu.vector_store %arg10[%c0_24, %c0_25], %63 {strides = array<i32>} : memref<32x1xf32, #tpu.memory_space<vmem>>, vector<32x1xf32>,
    } else {
    }
    %c2_i32 = arith.constant 2 : i32
    %36 = arith.cmpi eq, %1, %c2_i32 : i32
    %37 = arith.extui %36 : i1 to i32
    %c0_i32_14 = arith.constant 0 : i32
    %38 = arith.cmpi ne, %37, %c0_i32_14 : i32
    scf.if %38 {
      %c32_i32 = arith.constant 32 : i32
      %39 = vector.broadcast %c32_i32 : i32 to vector<32x1xi32>
      %40 = arith.subi %3, %39 : vector<32x1xi32>
      %c0_15 = arith.constant 0 : index
      %c0_16 = arith.constant 0 : index
      %41 = vector.load %arg8[%c0_15, %c0_16] : memref<128x128xbf16, #tpu.memory_space<vmem>>, vector<128x128xbf16>
      %cst_17 = arith.constant dense<0.000000e+00> : vector<32x128xf32>
      %42 = tpu.matmul %2, %41, %cst_17 {dimension_numbers = #tpu.dot_dimension_numbers<[1], [0], [0], [1], [0, 0, 1, 1], [], []>} : vector<32x128xbf16>, vector<128x128xbf16>, vector<32x128xf32> -> vector<32x128xf32>
      %c0_18 = arith.constant 0 : index
      %c0_19 = arith.constant 0 : index
      %43 = vector.load %arg9[%c0_18, %c0_19] : memref<1x128xf32, #tpu.memory_space<vmem>>, vector<1x128xf32>
      %44 = vector.broadcast %43 : vector<1x128xf32> to vector<32x128xf32>
      %45 = arith.addf %42, %44 : vector<32x128xf32>
      %cst_20 = arith.constant dense<0xFF800000> : vector<32xf32>
      %46 = vector.multi_reduction <maximumf>, %45, %cst_20 [1] : vector<32x128xf32> to vector<32xf32>
      %47 = vector.shape_cast %46 : vector<32xf32> to vector<32x1xf32>
      %48 = vector.broadcast %47 : vector<32x1xf32> to vector<32x128xf32>
      %49 = arith.subf %45, %48 : vector<32x128xf32>
      %50 = math.exp %49 : vector<32x128xf32>
      %cst_21 = arith.constant dense<0.000000e+00> : vector<32xf32>
      %51 = vector.multi_reduction <add>, %50, %cst_21 [1] : vector<32x128xf32> to vector<32xf32>
      %52 = vector.shape_cast %51 : vector<32xf32> to vector<32x1xf32>
      %53 = math.log %52 : vector<32x1xf32>
      %54 = arith.addf %53, %47 : vector<32x1xf32>
      %55 = tpu.iota {dimensions = array<i32: 1>} : vector<32x128xi32>
      %56 = vector.broadcast %40 : vector<32x1xi32> to vector<32x128xi32>
      %57 = arith.cmpi eq, %55, %56 : vector<32x128xi32>
      %cst_22 = arith.constant 0.000000e+00 : f32
      %58 = vector.broadcast %cst_22 : f32 to vector<32x128xf32>
      %59 = arith.select %57, %45, %58 : vector<32x128xi1>, vector<32x128xf32>
      %cst_23 = arith.constant dense<0.000000e+00> : vector<32xf32>
      %60 = vector.multi_reduction <add>, %59, %cst_23 [1] : vector<32x128xf32> to vector<32xf32>
      %61 = vector.shape_cast %60 : vector<32xf32> to vector<32x1xf32>
      %62 = arith.subf %54, %61 : vector<32x1xf32>
      %63 = arith.addf %29, %62 : vector<32x1xf32>
      %c0_24 = arith.constant 0 : index
      %c0_25 = arith.constant 0 : index
      %64 = vector.load %arg10[%c0_24, %c0_25] : memref<32x1xf32, #tpu.memory_space<vmem>>, vector<32x1xf32>
      tpu.vector_store %arg10[%c0_24, %c0_25], %63 {strides = array<i32>} : memref<32x1xf32, #tpu.memory_space<vmem>>, vector<32x1xf32>,
    } else {
    }
    return
  }
  func.func @transform_0(%arg0: i32, %arg1: memref<7xi32, #tpu.memory_space<smem>>) -> (i32, i32) {
    %c0_i32 = arith.constant 0 : i32
    %c0_i32_0 = arith.constant 0 : i32
    return %arg0, %c0_i32 : i32, i32
  }
  func.func @transform_1(%arg0: i32, %arg1: memref<7xi32, #tpu.memory_space<smem>>) -> (i32, i32) {
    %c0_i32 = arith.constant 0 : i32
    %c0_i32_0 = arith.constant 0 : i32
    return %arg0, %c0_i32 : i32, i32
  }
  func.func @transform_2(%arg0: i32, %arg1: memref<7xi32, #tpu.memory_space<smem>>) -> (i32, i32) {
    %c0_i32 = arith.constant 0 : i32
    %c0_i32_0 = arith.constant 0 : i32
    %c0_i32_1 = arith.constant 0 : i32
    return %c0_i32, %c0_i32_0 : i32, i32
  }
  func.func @transform_3(%arg0: i32, %arg1: memref<7xi32, #tpu.memory_space<smem>>) -> (i32, i32) {
    %c0_i32 = arith.constant 0 : i32
    %c0_i32_0 = arith.constant 0 : i32
    %c0_i32_1 = arith.constant 0 : i32
    return %c0_i32, %c0_i32_0 : i32, i32
  }
  func.func @transform_4(%arg0: i32, %arg1: memref<7xi32, #tpu.memory_space<smem>>) -> (i32, i32) {
    %c0_i32 = arith.constant 0 : i32
    %c0_i32_0 = arith.constant 0 : i32
    %c0_i32_1 = arith.constant 0 : i32
    return %c0_i32, %c0_i32_0 : i32, i32
  }
  func.func @transform_5(%arg0: i32, %arg1: memref<7xi32, #tpu.memory_space<smem>>) -> (i32, i32) {
    %c0_i32 = arith.constant 0 : i32
    %c0_i32_0 = arith.constant 0 : i32
    %c0_i32_1 = arith.constant 0 : i32
    return %c0_i32, %c0_i32_0 : i32, i32
  }
  func.func @transform_6(%arg0: i32, %arg1: memref<7xi32, #tpu.memory_space<smem>>) -> (i32, i32) {
    %c0_i32 = arith.constant 0 : i32
    %c0_i32_0 = arith.constant 0 : i32
    %c0_i32_1 = arith.constant 0 : i32
    return %c0_i32, %c0_i32_0 : i32, i32
  }
  func.func @transform_7(%arg0: i32, %arg1: memref<7xi32, #tpu.memory_space<smem>>) -> (i32, i32) {
    %c0_i32 = arith.constant 0 : i32
    %c0_i32_0 = arith.constant 0 : i32
    %c0_i32_1 = arith.constant 0 : i32
    return %c0_i32, %c0_i32_0 : i32, i32
  }
  func.func @transform_8(%arg0: i32, %arg1: memref<7xi32, #tpu.memory_space<smem>>) -> (i32, i32) {
    %c0_i32 = arith.constant 0 : i32
    %c0_i32_0 = arith.constant 0 : i32
    return %arg0, %c0_i32 : i32, i32
  }
}

</mosaic_0001>

<bundles_post_ra>
// kernel: tpu_custom_call.1
= control target key start
LH: loop header
LB: loop body
LE: loop exit
PB: predicated region body
PF: predicated region fallthrough
CT: control target
= control target key end

     0   :  { %s1727_s0 = inlined_call_operand.vmem [shape: s32[7], index: 0, kind: input, shape index: {}]   ;;  %s1728_s1 = inlined_call_operand.vmem [shape: bf16[224,128], index: 1, kind: input, shape index: {}]   ;;  %s1729_s2 = inlined_call_operand.vmem [shape: s32[224,1], index: 2, kind: input, shape index: {}]   ;;  %s1730_s3 = inlined_call_operand.vmem [shape: bf16[128,128], index: 3, kind: input, shape index: {}]   ;;  %s1731_s4 = inlined_call_operand.vmem [shape: f32[1,128], index: 4, kind: input, shape index: {}]   ;;  %s1732_s5 = inlined_call_operand.hbm [shape: bf16[128,128], index: 5, kind: input, shape index: {}]   ;;  %s1733_s6 = inlined_call_operand.vmem [shape: f32[1,128], index: 6, kind: input, shape index: {}]   ;;  %s1734_s7 = inlined_call_operand.hbm [shape: bf16[128,128], index: 7, kind: input, shape index: {}]   ;;  %s1735_s8 = inlined_call_operand.vmem [shape: f32[1,128], index: 8, kind: input, shape index: {}]   ;;  %s1736_s9 = inlined_call_operand.vmem [shape: f32[224,1], index: 9, kind: output, shape index: {}]  }
   0x1   :  { %s14_s11 = sshll.u32 %s1727_s0, 4  ;;  %s15_s11 = int_to_ptr.vmem [resolvable:$true] %s14_s11 }
   0x2   :  { %s1372_s12 = scalar_lea.vmem %s15_s11, 16  ;;  %p1377_p1 = scmp.lt.s32.totalorder %s15_s11, %s15_s11 }
   0x3   :  { %p1373_p0 = scmp.ne.s32.totalorder %s15_s11, %s1372_s12  ;;  %p1378_p2 = scmp.lt.s32.totalorder %s1372_s12, %s1372_s12 }
   0x5   :  { %p1379_p3 = por %p1378_p2, %p1377_p1 }
   0x7   :  { %p1380_p4 = pnand %p1379_p3, %p1373_p0 }
   0x9   :  { %1383 = shalt.err (!%p1380_p4)  }
   0xa   :  { %s1454_s13 = smov [#allocation3]  }
   0xb   :  { %17 = dma.vmem_to_smem %s15_s11, 16, %s1454_s13, [#allocation2] }
   0xc   :  { %1440 = dma.done.wait [#allocation2], 16 }
   0xd   :  { %1441 = vsyncadd [#allocation2], 4294967280 }
   0xe   :  { %19 = sfence }
   0xf   :  { %20 = vsyncpa [#allocation5], 0 }
  0x10   :  { %21 = vsyncpa [#allocation7], 0  ;;  %s1515_s14 = smov 0  }
  0x11 LB: > { %s1521_s0 = sadd.s32 4294967295, %s1452_s14   ;;  %p1112_p5 = scmp.ge.s32.totalorder %s1452_s14, 1  ;;  %s1452_s14 = sphi %s1515_s14, %s27_s14  }
  0x12   : > { %p236_p6 = scmp.lt.s32.totalorder %s1452_s14, 8  ;;  %s1455_s15 = smov [#allocation4]  }
  0x13   : > { %s254_s16 = sshll.u32 %s1455_s15, 4  ;;  %p1272_p8 = scmp.eq.s32.totalorder %s1521_s0, 0  ;;  %s255_s16 = int_to_ptr.vmem [resolvable:$true] %s254_s16 }
  0x14   : > { %p1525_p7 = pnand %p1112_p5, %p236_p6  ;;  %s1456_s18 = smov [#allocation6]  }
  0x15   : > { %s270_s19 = sshll.u32 %s1456_s18, 4  ;;  %s1395_s21 = scalar_lea.vmem %s255_s16, 1024  ;;  %s271_s19 = int_to_ptr.vmem [resolvable:$true] %s270_s19 }
  0x16   : > { %p1265_p9 = pneg %p1525_p7  ;;  %p1396_p12 = scmp.ne.s32.totalorder %s255_s16, %s1395_s21 }
  0x17   : > { %p1403_p1 = scmp.lt.s32.totalorder %s255_s16, %s255_s16  ;;  %p1404_p2 = scmp.lt.s32.totalorder %s1395_s21, %s1395_s21 }
  0x18   : > { %p1534_p10 = pnand %p1272_p8, %p1265_p9 }
  0x19   : > { %p1405_p3 = por %p1404_p2, %p1403_p1 }
  0x1a   : > { %p1386_p11 = pneg %p1534_p10 }
  0x1c   : > { %p1398_p13 = pnand %p1396_p12, %p1386_p11 }
  0x1e   : > { %p1399_p0 = pneg %p1398_p13 }
  0x20   : > { %p1406_p4 = pnand %p1405_p3, %p1399_p0 }
  0x22   : > { %1409 = shalt.err (!%p1406_p4)
}
  0x23   : > { %s1457_s22 = smov 64   ;;  %s1458_s23 = smov 4  }
  0x24   : > { %1268 = dma.hbm_to_vmem [thread:$0]  (!%p1534_p10), %s1732_s5, 1024, %s255_s16, [#allocation5], %s1457_s22, %s1457_s22, %s1458_s23  }
  0x25   : > { %s1421_s26 = scalar_lea.vmem %s271_s19, 1024  ;;  %p1429_p12 = scmp.lt.s32.totalorder %s271_s19, %s271_s19 }
  0x26   : > { %p1422_p5 = scmp.ne.s32.totalorder %s271_s19, %s1421_s26  ;;  %p1430_p13 = scmp.lt.s32.totalorder %s1421_s26, %s1421_s26 }
  0x28   : > { %p1424_p6 = pnand %p1422_p5, %p1386_p11  ;;  %p1431_p1 = por %p1430_p13, %p1429_p12 }
  0x2a   : > { %p1425_p9 = pneg %p1424_p6 }
  0x2c   : > { %p1432_p0 = pnand %p1431_p1, %p1425_p9 }
  0x2e   : > { %1435 = shalt.err (!%p1432_p0)
}
  0x2f   : > { %1271 = dma.hbm_to_vmem [thread:$0]  (!%p1534_p10), %s1734_s7, 1024, %s271_s19, [#allocation7], %s1457_s22, %s1457_s22, %s1458_s23  }
  0x30   : > { %307 = sbr.rel (%p1525_p7) target bundleno = 1734 (0x6c6), region = 52 }
  0x35   : > { %1443 = dma.done.wait (%p1272_p8), [#allocation5], 1024  }
  0x36   : > { %1445 = vsyncadd (%p1272_p8), [#allocation5], 4294966272 }
  0x37   : > { %1447 = dma.done.wait (%p1272_p8), [#allocation7], 1024  }
  0x38   : > { %1449 = vsyncadd (%p1272_p8), [#allocation7], 4294966272  ;;  %s1119_s29 = sshll.u32 %s1521_s0, 2  ;;  %v1294_v0 = vld [vmem:[%s1730_s3 + $0x38] sm:$0xff]   ;;  %v1295_v1 = vld [vmem:[%s1730_s3 + $0x30] sm:$0xff]   ;;  %v1459_v10 = vmov 0   ;;  %v560_v43 = vlaneseq }
  0x39   : > { %p351_p11 = scmp.lt.s32.totalorder %s1119_s29, 27  ;;  %1197 = vmatprep.subr.bf16.mxu0 %v1294_v0  ;;  %v1296_v2 = vld [vmem:[%s1730_s3 + $0x28] sm:$0xff]   ;;  %v1297_v3 = vld [vmem:[%s1730_s3 + $0x20] sm:$0xff]   ;;  %v1298_v5 = vld [vmem:[%s1730_s3 + $0x18] sm:$0xff]   ;;  %1293 = vset.pattern.permute.xlu1 %v1459_v10  ;;  %s1613_s17 = sld [smem:[#allocation3 + %s1521_s0]] }
  0x3a   : > { %1198 = vmatpush3.bf16.msra.mxu0 %v1294_v0  ;;  %v1299_v6 = vld [vmem:[%s1730_s3 + $0x10] sm:$0xff]   ;;  %v1300_v7 = vld [vmem:[%s1730_s3 + $0x8] sm:$0xff]   ;;  %v1301_v8 = vld [vmem:[%s1730_s3] sm:$0xff]   ;;  %1292 = vset.pattern.permute.xlu0 %v1459_v10  ;;  %v1639_v47 = vand.u32 127, %v560_v43 }
  0x3b   : > { %s1740_s29 = smov (!%p351_p11, %s1119_s29), 27  ;;  %1199 = vmatprep.subr.bf16.mxu0 %v1295_v1  ;;  %v1125_v11 = vld [vmem:[%s1731_s4] ss:$0 sm:$0xff] }
  0x3c   : > { %s1120_s13 = sshll.u32 %s1740_s29, 2  ;;  %s1122_s10 = sshll.u32 %s1740_s29, 3 }
  0x3d   : > { %s354_s19 = scalar_lea.vmem %s1728_s1, %s1120_s13  ;;  %s1607_s13 = scalar_lea.vmem %s1736_s9, %s1122_s10 }
  0x3e   : > { %1200 = vmatpush3.bf16.msra.mxu0 %v1295_v1  ;;  %v1585_v4 = vld [vmem:[%s354_s19] sm:$0xff]   ;;  %v1600_v9 = vld [vmem:[%s354_s19 + $0x8] sm:$0xff]   ;;  %s360_s19 = scalar_lea.vmem %s1729_s2, %s1122_s10 }
  0x3f   : > { %1201 = vmatprep.subr.bf16.mxu0 %v1296_v2  ;;  %1213 = vmatprep.mubr.bf16.mxu0 %v1585_v4  ;;  %p378_p7 = scmp.eq.s32.totalorder %s1613_s17, 0  ;;  %s379_s20 = ssub.s32 18, %s1613_s17  ;;  %v1623_v21 = vld [vmem:[%s360_s19 + $0x8] sm:$0xff]  ;;  %v1626_v24 = vld [vmem:[%s360_s19 + $0x10] sm:$0xff]  ;;  %v1629_v26 = vld [vmem:[%s360_s19] sm:$0xff] }
  0x40   : > { %v380_v22 = vstv %s379_s20  ;;  %v1631_v27 = vld [vmem:[%s360_s19 + $0x18] sm:$0xff]  ;;  %p1136_p8 = scmp.ne.s32.totalorder %s1613_s17, 0 }
  0x41   : > { %s381_s29 = scalar_select %p378_p7, 1, 0 }
  0x42   : > { %1202 = vmatpush3.bf16.msra.mxu0 %v1296_v2 }
  0x43   : > { %1203 = vmatprep.subr.bf16.mxu0 %v1297_v3  ;;  %v382_v20 = vstv %s381_s29 }
  0x44   : > { %vm383_vm0 = vcmp.eq.s32.totalorder %v382_v20, 1 }
  0x45   : > { %v385_v23 = vsel %vm383_vm0, %v1623_v21, %v380_v22  ;;  %v386_v25 = vsel %vm383_vm0, %v1626_v24, %v380_v22  ;;  %v384_v28 = vsel %vm383_vm0, %v1629_v26, %v380_v22  ;;  %v387_v29 = vsel %vm383_vm0, %v1631_v27, %v380_v22 }
  0x46   : > { %1204 = vmatpush3.bf16.msra.mxu0 %v1297_v3 }
  0x47   : > { %1205 = vmatprep.subr.bf16.mxu0 %v1298_v5 }
  0x4a   : > { %1206 = vmatpush3.bf16.msra.mxu0 %v1298_v5 }
  0x4b   : > { %1207 = vmatprep.subr.bf16.mxu0 %v1299_v6 }
  0x4e   : > { %1208 = vmatpush3.bf16.msra.mxu0 %v1299_v6 }
  0x4f   : > { %1209 = vmatprep.subr.bf16.mxu0 %v1300_v7 }
  0x52   : > { %1210 = vmatpush3.bf16.msra.mxu0 %v1300_v7 }
  0x53   : > { %1211 = vmatprep.subr.bf16.mxu0 %v1301_v8 }
  0x56   : > { %1212 = vmatpush3.bf16.msra.mxu0 %v1301_v8 }
  0x59   : > { %1214 = vmatmul.mubr.bf16.vlgmr.msra.gmra.mxu0 %v1600_v9 }
 0x119   : > { %v1215_v12 = vpop.f32.mrf.mxu0 }
 0x11a   : > { %v514_v13 = vadd.f32 %v1215_v12, %v1125_v11 }
 0x11b   : > { %v505_v14 = vpop.f32.mrf.mxu0 }
 0x11c   : > { %v506_v15 = vadd.f32 %v1125_v11, %v505_v14  ;;  %524 = vmax.xlane.f32.xlu1 %v514_v13 }
 0x11d   : > { %v1216_v16 = vpop.f32.mrf.mxu0 }
 0x11e   : > { %v1615_v17 = vadd.f32 %v1216_v16, %v1125_v11  ;;  %520 = vmax.xlane.f32.xlu0 %v506_v15 }
 0x11f   : > { %v508_v18 = vpop.f32.mrf.mxu0 }
 0x120   : > { %v509_v19 = vadd.f32 %v1125_v11, %v508_v18  ;;  %526 = vmax.xlane.f32.xlu1 %v1615_v17 }
 0x122   : > { %522 = vmax.xlane.f32.xlu0 %v509_v19 }
 0x131   : > { %566 = vperm.xlu1 %1293, %v385_v23  }
 0x135   : > { %569 = vperm.xlu1 %1293, %v386_v25  }
 0x138   : > { %563 = vperm.xlu0 %1292, %v384_v28  }
 0x139   : > { %572 = vperm.xlu1 %1293, %v387_v29  }
 0x1a5   : > { %v525_v30 = vpop.xlane.xlu1 %524 }
 0x1a6   : > { %v530_v31 = vsub.f32 %v514_v13, %v525_v30 }
 0x1a7   : > { %v521_v32 = vpop.xlane.xlu0 %520 }
 0x1a8   : > { %v528_v33 = vsub.f32 %v506_v15, %v521_v32  ;;  %v536_v36 = vmul.f32 1.442695, %v530_v31 }
 0x1a9   : > { %v1635_v34 = vpop.xlane.xlu1 %526 }
 0x1aa   : > { %v532_v35 = vmul.f32 1.442695, %v528_v33  ;;  %v531_v38 = vsub.f32 %v1615_v17, %v1635_v34 }
 0x1ab   : > { %v523_v37 = vpop.xlane.xlu0 %522 }
 0x1ac   : > { %1304 = vpow2.f32 %v532_v35  ;;  %v529_v39 = vsub.f32 %v509_v19, %v523_v37  ;;  %v538_v41 = vmul.f32 1.442695, %v531_v38 }
 0x1ad   : > { %1306 = vpow2.f32 %v536_v36  ;;  %v567_v42 = vpop.permute.xlu1 %566 }
 0x1ae   : > { %v534_v40 = vmul.f32 1.442695, %v529_v39  ;;  %vm575_vm3 = vcmp.eq.s32.totalorder %v1639_v47, %v567_v42 }
 0x1af   : > { %v579_v54 = vsel %vm575_vm3, %v509_v19, 0.0 }
 0x1b0   : > { %1308 = vpow2.f32 %v534_v40 }
 0x1b1   : > { %1310 = vpow2.f32 %v538_v41  ;;  %v570_v45 = vpop.permute.xlu1 %569 }
 0x1b2   : > { %vm576_vm1 = vcmp.eq.s32.totalorder %v1639_v47, %v570_v45 }
 0x1b3   : > { %v564_v49 = vpop.permute.xlu0 %563  ;;  %v580_v51 = vsel %vm576_vm1, %v514_v13, 0.0 }
 0x1b4   : > { %vm574_vm2 = vcmp.eq.s32.totalorder %v1639_v47, %v564_v49 }
 0x1b5   : > { %v578_v52 = vsel %vm574_vm2, %v506_v15, 0.0  ;;  %v573_v53 = vpop.permute.xlu1 %572 }
 0x1b6   : > { %vm577_vm4 = vcmp.eq.s32.totalorder %v1639_v47, %v573_v53 }
 0x1b7   : > { %v581_v55 = vsel %vm577_vm4, %v1615_v17, 0.0 }
 0x1b9   : > { %v1305_v44 = vpop.eup %1304 }
 0x1ba   : > { %540 = vadd.xlane.f32.xlu1 %v1305_v44  ;;  %v1307_v46 = vpop.eup %1306 }
 0x1bd   : > { %v1309_v48 = vpop.eup %1308 }
 0x1be   : > { %544 = vadd.xlane.f32.xlu1 %v1307_v46  ;;  %542 = vadd.xlane.f32.xlu0 %v1309_v48  ;;  %v1311_v50 = vpop.eup %1310 }
 0x1c2   : > { %546 = vadd.xlane.f32.xlu1 %v1311_v50  ;;  %586 = vadd.xlane.f32.xlu0 %v580_v51 }
 0x1c6   : > { %582 = vadd.xlane.f32.xlu1 %v578_v52 }
 0x1ca   : > { %584 = vadd.xlane.f32.xlu1 %v579_v54 }
 0x1ce   : > { %588 = vadd.xlane.f32.xlu1 %v581_v55 }
 0x243   : > { %v541_v56 = vpop.xlane.xlu1 %540 }
 0x244   : > { %1312 = vlog2.f32 %v541_v56 }
 0x247   : > { %v545_v57 = vpop.xlane.xlu1 %544  ;;  %v543_v58 = vpop.xlane.xlu0 %542 }
 0x248   : > { %1314 = vlog2.f32 %v545_v57 }
 0x249   : > { %1316 = vlog2.f32 %v543_v58 }
 0x24b   : > { %v547_v59 = vpop.xlane.xlu1 %546  ;;  %v587_v10 = vpop.xlane.xlu0 %586 }
 0x24c   : > { %1318 = vlog2.f32 %v547_v59 }
 0x24f   : > { %v583_v61 = vpop.xlane.xlu1 %582 }
 0x251   : > { %v1313_v60 = vpop.eup %1312 }
 0x252   : > { %v549_v62 = vmul.f32 0.6931472, %v1313_v60 }
 0x253   : > { %v585_v6 = vpop.xlane.xlu1 %584 }
 0x254   : > { %v556_v63 = vadd.f32 %v549_v62, %v521_v32 }
 0x255   : > { %v1315_v0 = vpop.eup %1314 }
 0x256   : > { %v1317_v1 = vpop.eup %1316  ;;  %v553_v2 = vmul.f32 0.6931472, %v1315_v0  ;;  %v1646_v3 = vsub.f32 %v556_v63, %v583_v61 }
 0x257   : > { %v551_v5 = vmul.f32 0.6931472, %v1317_v1  ;;  %v589_v16 = vpop.xlane.xlu1 %588 }
 0x258   : > { %v558_v7 = vadd.f32 %v553_v2, %v525_v30 }
 0x259   : > { %v1319_v8 = vpop.eup %1318  ;;  %v557_v11 = vadd.f32 %v551_v5, %v523_v37 }
 0x25a   : > { %v555_v12 = vmul.f32 0.6931472, %v1319_v8  ;;  %v1648_v13 = vsub.f32 %v558_v7, %v587_v10  ;;  %596 = sbr.rel (%p1136_p8) target bundleno = 610 (0x262), region = 64 }
 0x25b   : > { %v1650_v14 = vsub.f32 %v557_v11, %v585_v6 }
 0x25c   : > { %v559_v15 = vadd.f32 %v555_v12, %v1635_v34 }
 0x25e   : > { %v1653_v17 = vsub.f32 %v559_v15, %v589_v16 }
 0x25f   : > { %vm597_vm5 = vcmask 7168  }
 0x260   : > { %598 = vst.msk [vmem:[%s1607_s13] sm:$0xff] %vm597_vm5, %v1646_v3  ;;  %599 = vst.msk [vmem:[%s1607_s13 + $0x8] sm:$0xff] %vm597_vm5, %v1650_v14 }
 0x261   : > { %600 = vst.msk [vmem:[%s1607_s13 + $0x10] sm:$0xff] %vm597_vm5, %v1648_v13  ;;  %601 = vst.msk [vmem:[%s1607_s13 + $0x18] sm:$0xff] %vm597_vm5, %v1653_v17 }
 0x262 PF: > { %p1137_p10 = scmp.ne.s32.totalorder %s1613_s17, 1 }
 0x264   : > { %605 = sbr.rel (%p1137_p10) target bundleno = 1172 (0x494), region = 68 }
 0x269   : > { %v1322_v18 = vld [vmem:[#allocation4 + $0x38] sm:$0xff]   ;;  %1233 = vmatprep.mubr.bf16.mxu0 %v1585_v4  ;;  %v1323_v19 = vld [vmem:[#allocation4 + $0x30] sm:$0xff]   ;;  %v1324_v20 = vld [vmem:[#allocation4 + $0x28] sm:$0xff]   ;;  %v1460_v30 = vmov 0   ;;  %v1139_v40 = vadd.s32 4294967280, %v1623_v21  ;;  %v1140_v41 = vadd.s32 4294967280, %v1626_v24 }
 0x26a   : > { %1217 = vmatprep.subr.bf16.mxu0 %v1322_v18  ;;  %v1325_v22 = vld [vmem:[#allocation4 + $0x20] sm:$0xff]   ;;  %v1326_v23 = vld [vmem:[#allocation4 + $0x18] sm:$0xff]   ;;  %v1327_v25 = vld [vmem:[#allocation4 + $0x10] sm:$0xff]   ;;  %1321 = vset.pattern.permute.xlu1 %v1460_v30  ;;  %v1138_v42 = vadd.s32 4294967280, %v1629_v26  ;;  %v1141_v43 = vadd.s32 4294967280, %v1631_v27  ;;  %vm806_vm10 = vcmask 7168  }
 0x26b   : > { %1218 = vmatpush3.bf16.msra.mxu0 %v1322_v18  ;;  %v1328_v28 = vld [vmem:[#allocation4 + $0x8] sm:$0xff]   ;;  %v1329_v29 = vld [vmem:[#allocation4] sm:$0xff]   ;;  %1320 = vset.pattern.permute.xlu0 %v1460_v30 }
 0x26c   : > { %1219 = vmatprep.subr.bf16.mxu0 %v1323_v19  ;;  %v1142_v31 = vld [vmem:[%s1733_s6] ss:$0 sm:$0xff] }
 0x26f   : > { %1220 = vmatpush3.bf16.msra.mxu0 %v1323_v19 }
 0x270   : > { %1221 = vmatprep.subr.bf16.mxu0 %v1324_v20 }
 0x273   : > { %1222 = vmatpush3.bf16.msra.mxu0 %v1324_v20 }
 0x274   : > { %1223 = vmatprep.subr.bf16.mxu0 %v1325_v22 }
 0x277   : > { %1224 = vmatpush3.bf16.msra.mxu0 %v1325_v22 }
 0x278   : > { %1225 = vmatprep.subr.bf16.mxu0 %v1326_v23 }
 0x27b   : > { %1226 = vmatpush3.bf16.msra.mxu0 %v1326_v23 }
 0x27c   : > { %1227 = vmatprep.subr.bf16.mxu0 %v1327_v25 }
 0x27f   : > { %1228 = vmatpush3.bf16.msra.mxu0 %v1327_v25 }
 0x280   : > { %1229 = vmatprep.subr.bf16.mxu0 %v1328_v28 }
 0x283   : > { %1230 = vmatpush3.bf16.msra.mxu0 %v1328_v28 }
 0x284   : > { %1231 = vmatprep.subr.bf16.mxu0 %v1329_v29 }
 0x287   : > { %1232 = vmatpush3.bf16.msra.mxu0 %v1329_v29 }
 0x28a   : > { %1234 = vmatmul.mubr.bf16.vlgmr.msra.gmra.mxu0 %v1600_v9 }
 0x34a   : > { %v1235_v32 = vpop.f32.mrf.mxu0 }
 0x34b   : > { %v724_v33 = vadd.f32 %v1235_v32, %v1142_v31 }
 0x34c   : > { %v715_v34 = vpop.f32.mrf.mxu0 }
 0x34d   : > { %v716_v35 = vadd.f32 %v1142_v31, %v715_v34  ;;  %734 = vmax.xlane.f32.xlu1 %v724_v33 }
 0x34e   : > { %v1236_v36 = vpop.f32.mrf.mxu0 }
 0x34f   : > { %v727_v37 = vadd.f32 %v1236_v36, %v1142_v31  ;;  %730 = vmax.xlane.f32.xlu0 %v716_v35 }
 0x350   : > { %v718_v38 = vpop.f32.mrf.mxu0 }
 0x351   : > { %v719_v39 = vadd.f32 %v1142_v31, %v718_v38  ;;  %736 = vmax.xlane.f32.xlu1 %v727_v37 }
 0x353   : > { %732 = vmax.xlane.f32.xlu0 %v719_v39 }
 0x362   : > { %774 = vperm.xlu1 %1321, %v1139_v40  }
 0x366   : > { %777 = vperm.xlu1 %1321, %v1140_v41  }
 0x369   : > { %771 = vperm.xlu0 %1320, %v1138_v42  }
 0x36a   : > { %780 = vperm.xlu1 %1321, %v1141_v43  }
 0x3d6   : > { %v735_v44 = vpop.xlane.xlu1 %734 }
 0x3d7   : > { %v740_v45 = vsub.f32 %v724_v33, %v735_v44 }
 0x3d8   : > { %v731_v46 = vpop.xlane.xlu0 %730 }
 0x3d9   : > { %v738_v48 = vsub.f32 %v716_v35, %v731_v46  ;;  %v746_v51 = vmul.f32 1.442695, %v740_v45 }
 0x3da   : > { %v1674_v49 = vpop.xlane.xlu1 %736 }
 0x3db   : > { %v742_v50 = vmul.f32 1.442695, %v738_v48  ;;  %v741_v53 = vsub.f32 %v727_v37, %v1674_v49 }
 0x3dc   : > { %v733_v52 = vpop.xlane.xlu0 %732 }
 0x3dd   : > { %1330 = vpow2.f32 %v742_v50  ;;  %v739_v54 = vsub.f32 %v719_v39, %v733_v52  ;;  %v748_v56 = vmul.f32 1.442695, %v741_v53 }
 0x3de   : > { %1332 = vpow2.f32 %v746_v51  ;;  %v775_v57 = vpop.permute.xlu1 %774 }
 0x3df   : > { %v744_v55 = vmul.f32 1.442695, %v739_v54  ;;  %vm783_vm8 = vcmp.eq.s32.totalorder %v1639_v47, %v775_v57 }
 0x3e0   : > { %v787_v5 = vsel %vm783_vm8, %v719_v39, 0.0 }
 0x3e1   : > { %1334 = vpow2.f32 %v744_v55 }
 0x3e2   : > { %1336 = vpow2.f32 %v748_v56  ;;  %v778_v59 = vpop.permute.xlu1 %777 }
 0x3e3   : > { %vm784_vm6 = vcmp.eq.s32.totalorder %v1639_v47, %v778_v59 }
 0x3e4   : > { %v772_v62 = vpop.permute.xlu0 %771  ;;  %v788_v0 = vsel %vm784_vm6, %v724_v33, 0.0 }
 0x3e5   : > { %vm782_vm7 = vcmp.eq.s32.totalorder %v1639_v47, %v772_v62 }
 0x3e6   : > { %v786_v1 = vsel %vm782_vm7, %v716_v35, 0.0  ;;  %v781_v2 = vpop.permute.xlu1 %780 }
 0x3e7   : > { %vm785_vm9 = vcmp.eq.s32.totalorder %v1639_v47, %v781_v2 }
 0x3e8   : > { %v789_v6 = vsel %vm785_vm9, %v727_v37, 0.0 }
 0x3ea   : > { %v1331_v58 = vpop.eup %1330 }
 0x3eb   : > { %750 = vadd.xlane.f32.xlu1 %v1331_v58  ;;  %v1333_v60 = vpop.eup %1332 }
 0x3ee   : > { %v1335_v61 = vpop.eup %1334 }
 0x3ef   : > { %754 = vadd.xlane.f32.xlu1 %v1333_v60  ;;  %752 = vadd.xlane.f32.xlu0 %v1335_v61  ;;  %v1337_v63 = vpop.eup %1336 }
 0x3f3   : > { %756 = vadd.xlane.f32.xlu1 %v1337_v63  ;;  %794 = vadd.xlane.f32.xlu0 %v788_v0 }
 0x3f7   : > { %790 = vadd.xlane.f32.xlu1 %v786_v1 }
 0x3fb   : > { %792 = vadd.xlane.f32.xlu1 %v787_v5 }
 0x3ff   : > { %796 = vadd.xlane.f32.xlu1 %v789_v6 }
 0x474   : > { %v751_v7 = vpop.xlane.xlu1 %750 }
 0x475   : > { %1338 = vlog2.f32 %v751_v7 }
 0x478   : > { %v755_v8 = vpop.xlane.xlu1 %754  ;;  %v753_v10 = vpop.xlane.xlu0 %752 }
 0x479   : > { %1340 = vlog2.f32 %v755_v8 }
 0x47a   : > { %1342 = vlog2.f32 %v753_v10 }
 0x47c   : > { %v757_v11 = vpop.xlane.xlu1 %756  ;;  %v795_v32 = vpop.xlane.xlu0 %794 }
 0x47d   : > { %1344 = vlog2.f32 %v757_v11 }
 0x480   : > { %v791_v15 = vpop.xlane.xlu1 %790 }
 0x482   : > { %v1339_v12 = vpop.eup %1338 }
 0x483   : > { %v759_v16 = vmul.f32 0.6931472, %v1339_v12 }
 0x484   : > { %v793_v28 = vpop.xlane.xlu1 %792 }
 0x485   : > { %v766_v18 = vadd.f32 %v759_v16, %v731_v46 }
 0x486   : > { %v1341_v19 = vpop.eup %1340 }
 0x487   : > { %v1343_v20 = vpop.eup %1342  ;;  %v763_v22 = vmul.f32 0.6931472, %v1341_v19  ;;  %v798_v23 = vsub.f32 %v766_v18, %v791_v15 }
 0x488   : > { %v761_v25 = vmul.f32 0.6931472, %v1343_v20  ;;  %v797_v40 = vpop.xlane.xlu1 %796 }
 0x489   : > { %v768_v29 = vadd.f32 %v763_v22, %v735_v44  ;;  %v802_v30 = vadd.f32 %v798_v23, %v1646_v3 }
 0x48a   : > { %v1345_v31 = vpop.eup %1344  ;;  %v767_v33 = vadd.f32 %v761_v25, %v733_v52 }
 0x48b   : > { %v765_v34 = vmul.f32 0.6931472, %v1345_v31  ;;  %v800_v35 = vsub.f32 %v768_v29, %v795_v32  ;;  %807 = vst.msk [vmem:[%s1607_s13] sm:$0xff] %vm806_vm10, %v802_v30 }
 0x48c   : > { %v799_v36 = vsub.f32 %v767_v33, %v793_v28 }
 0x48d   : > { %v804_v37 = vadd.f32 %v800_v35, %v1648_v13  ;;  %v769_v38 = vadd.f32 %v765_v34, %v1674_v49 }
 0x48e   : > { %v803_v39 = vadd.f32 %v799_v36, %v1650_v14 }
 0x48f   : > { %809 = vst.msk [vmem:[%s1607_s13 + $0x10] sm:$0xff] %vm806_vm10, %v804_v37  ;;  %v801_v41 = vsub.f32 %v769_v38, %v797_v40 }
 0x490   : > { %808 = vst.msk [vmem:[%s1607_s13 + $0x8] sm:$0xff] %vm806_vm10, %v803_v39 }
 0x491   : > { %v805_v42 = vadd.f32 %v801_v41, %v1653_v17 }
 0x493   : > { %810 = vst.msk [vmem:[%s1607_s13 + $0x18] sm:$0xff] %vm806_vm10, %v805_v42 }
 0x494 PF: > { %p1151_p2 = scmp.ne.s32.totalorder %s1613_s17, 2 }
 0x496   : > { %814 = sbr.rel (%p1151_p2) target bundleno = 1734 (0x6c6), region = 72 }
 0x49b   : > { %v1348_v43 = vld [vmem:[#allocation6 + $0x38] sm:$0xff]   ;;  %1253 = vmatprep.mubr.bf16.mxu0 %v1585_v4  ;;  %v1349_v44 = vld [vmem:[#allocation6 + $0x30] sm:$0xff]   ;;  %v1350_v45 = vld [vmem:[#allocation6 + $0x28] sm:$0xff]   ;;  %v1461_v51 = vmov 0   ;;  %v1154_v61 = vadd.s32 4294967264, %v1626_v24  ;;  %v1152_v62 = vadd.s32 4294967264, %v1629_v26 }
 0x49c   : > { %1237 = vmatprep.subr.bf16.mxu0 %v1348_v43  ;;  %v1351_v46 = vld [vmem:[#allocation6 + $0x20] sm:$0xff]   ;;  %v1352_v48 = vld [vmem:[#allocation6 + $0x18] sm:$0xff]   ;;  %v1353_v49 = vld [vmem:[#allocation6 + $0x10] sm:$0xff]   ;;  %1347 = vset.pattern.permute.xlu1 %v1461_v51  ;;  %v1155_v63 = vadd.s32 4294967264, %v1631_v27  ;;  %vm1015_vm15 = vcmask 7168  }
 0x49d   : > { %1238 = vmatpush3.bf16.msra.mxu0 %v1348_v43  ;;  %v1354_v50 = vld [vmem:[#allocation6 + $0x8] sm:$0xff]   ;;  %v1355_v4 = vld [vmem:[#allocation6] sm:$0xff]   ;;  %1346 = vset.pattern.permute.xlu0 %v1461_v51 }
 0x49e   : > { %1239 = vmatprep.subr.bf16.mxu0 %v1349_v44  ;;  %v1156_v52 = vld [vmem:[%s1735_s8] ss:$0 sm:$0xff] }
 0x4a1   : > { %1240 = vmatpush3.bf16.msra.mxu0 %v1349_v44 }
 0x4a2   : > { %1241 = vmatprep.subr.bf16.mxu0 %v1350_v45 }
 0x4a5   : > { %1242 = vmatpush3.bf16.msra.mxu0 %v1350_v45 }
 0x4a6   : > { %1243 = vmatprep.subr.bf16.mxu0 %v1351_v46 }
 0x4a9   : > { %1244 = vmatpush3.bf16.msra.mxu0 %v1351_v46 }
 0x4aa   : > { %1245 = vmatprep.subr.bf16.mxu0 %v1352_v48 }
 0x4ad   : > { %1246 = vmatpush3.bf16.msra.mxu0 %v1352_v48 }
 0x4ae   : > { %1247 = vmatprep.subr.bf16.mxu0 %v1353_v49 }
 0x4b1   : > { %1248 = vmatpush3.bf16.msra.mxu0 %v1353_v49 }
 0x4b2   : > { %1249 = vmatprep.subr.bf16.mxu0 %v1354_v50 }
 0x4b5   : > { %1250 = vmatpush3.bf16.msra.mxu0 %v1354_v50 }
 0x4b6   : > { %1251 = vmatprep.subr.bf16.mxu0 %v1355_v4 }
 0x4b9   : > { %1252 = vmatpush3.bf16.msra.mxu0 %v1355_v4 }
 0x4bc   : > { %1254 = vmatmul.mubr.bf16.vlgmr.msra.gmra.mxu0 %v1600_v9  ;;  %v1153_v9 = vadd.s32 4294967264, %v1623_v21 }
 0x57c   : > { %v1255_v53 = vpop.f32.mrf.mxu0 }
 0x57d   : > { %v933_v54 = vadd.f32 %v1255_v53, %v1156_v52 }
 0x57e   : > { %v924_v55 = vpop.f32.mrf.mxu0 }
 0x57f   : > { %v925_v56 = vadd.f32 %v1156_v52, %v924_v55  ;;  %943 = vmax.xlane.f32.xlu1 %v933_v54 }
 0x580   : > { %v1256_v57 = vpop.f32.mrf.mxu0 }
 0x581   : > { %v936_v58 = vadd.f32 %v1256_v57, %v1156_v52  ;;  %939 = vmax.xlane.f32.xlu0 %v925_v56 }
 0x582   : > { %v927_v59 = vpop.f32.mrf.mxu0 }
 0x583   : > { %v928_v60 = vadd.f32 %v1156_v52, %v927_v59  ;;  %945 = vmax.xlane.f32.xlu1 %v936_v58 }
 0x585   : > { %941 = vmax.xlane.f32.xlu0 %v928_v60 }
 0x594   : > { %983 = vperm.xlu1 %1347, %v1153_v9  }
 0x598   : > { %986 = vperm.xlu1 %1347, %v1154_v61  }
 0x59b   : > { %980 = vperm.xlu0 %1346, %v1152_v62  }
 0x59c   : > { %989 = vperm.xlu1 %1347, %v1155_v63  }
 0x608   : > { %v944_v0 = vpop.xlane.xlu1 %943 }
 0x609   : > { %v949_v1 = vsub.f32 %v933_v54, %v944_v0 }
 0x60a   : > { %v940_v2 = vpop.xlane.xlu0 %939 }
 0x60b   : > { %v947_v5 = vsub.f32 %v925_v56, %v940_v2  ;;  %v955_v8 = vmul.f32 1.442695, %v949_v1 }
 0x60c   : > { %v1704_v6 = vpop.xlane.xlu1 %945 }
 0x60d   : > { %v951_v7 = vmul.f32 1.442695, %v947_v5  ;;  %v950_v21 = vsub.f32 %v936_v58, %v1704_v6 }
 0x60e   : > { %v942_v10 = vpop.xlane.xlu0 %941 }
 0x60f   : > { %1356 = vpow2.f32 %v951_v7  ;;  %v948_v24 = vsub.f32 %v928_v60, %v942_v10  ;;  %v957_v26 = vmul.f32 1.442695, %v950_v21 }
 0x610   : > { %1358 = vpow2.f32 %v955_v8  ;;  %v984_v27 = vpop.permute.xlu1 %983 }
 0x611   : > { %v953_v11 = vmul.f32 1.442695, %v948_v24  ;;  %vm992_vm13 = vcmp.eq.s32.totalorder %v1639_v47, %v984_v27 }
 0x612   : > { %v996_v28 = vsel %vm992_vm13, %v928_v60, 0.0 }
 0x613   : > { %1360 = vpow2.f32 %v953_v11 }
 0x614   : > { %1362 = vpow2.f32 %v957_v26  ;;  %v987_v15 = vpop.permute.xlu1 %986 }
 0x615   : > { %vm993_vm11 = vcmp.eq.s32.totalorder %v1639_v47, %v987_v15 }
 0x616   : > { %v981_v19 = vpop.permute.xlu0 %980  ;;  %v997_v22 = vsel %vm993_vm11, %v933_v54, 0.0 }
 0x617   : > { %vm991_vm12 = vcmp.eq.s32.totalorder %v1639_v47, %v981_v19 }
 0x618   : > { %v995_v23 = vsel %vm991_vm12, %v925_v56, 0.0  ;;  %v990_v25 = vpop.permute.xlu1 %989 }
 0x619   : > { %vm994_vm14 = vcmp.eq.s32.totalorder %v1639_v47, %v990_v25 }
 0x61a   : > { %v998_v29 = vsel %vm994_vm14, %v936_v58, 0.0 }
 0x61c   : > { %v1357_v12 = vpop.eup %1356 }
 0x61d   : > { %959 = vadd.xlane.f32.xlu1 %v1357_v12  ;;  %v1359_v16 = vpop.eup %1358 }
 0x620   : > { %v1361_v18 = vpop.eup %1360 }
 0x621   : > { %963 = vadd.xlane.f32.xlu1 %v1359_v16  ;;  %961 = vadd.xlane.f32.xlu0 %v1361_v18  ;;  %v1363_v20 = vpop.eup %1362 }
 0x625   : > { %965 = vadd.xlane.f32.xlu1 %v1363_v20  ;;  %1003 = vadd.xlane.f32.xlu0 %v997_v22 }
 0x629   : > { %999 = vadd.xlane.f32.xlu1 %v995_v23 }
 0x62d   : > { %1001 = vadd.xlane.f32.xlu1 %v996_v28 }
 0x631   : > { %1005 = vadd.xlane.f32.xlu1 %v998_v29 }
 0x6a6   : > { %v960_v30 = vpop.xlane.xlu1 %959 }
 0x6a7   : > { %1364 = vlog2.f32 %v960_v30 }
 0x6aa   : > { %v964_v31 = vpop.xlane.xlu1 %963  ;;  %v962_v32 = vpop.xlane.xlu0 %961 }
 0x6ab   : > { %1366 = vlog2.f32 %v964_v31 }
 0x6ac   : > { %1368 = vlog2.f32 %v962_v32 }
 0x6ae   : > { %v966_v33 = vpop.xlane.xlu1 %965  ;;  %v1004_v46 = vpop.xlane.xlu0 %1003 }
 0x6af   : > { %1370 = vlog2.f32 %v966_v33 }
 0x6b2   : > { %v1000_v35 = vpop.xlane.xlu1 %999 }
 0x6b4   : > { %v1365_v34 = vpop.eup %1364 }
 0x6b5   : > { %v968_v36 = vmul.f32 0.6931472, %v1365_v34 }
 0x6b6   : > { %v1002_v42 = vpop.xlane.xlu1 %1001 }
 0x6b7   : > { %v975_v37 = vadd.f32 %v968_v36, %v940_v2 }
 0x6b8   : > { %v1367_v38 = vpop.eup %1366 }
 0x6b9   : > { %v1369_v39 = vpop.eup %1368  ;;  %v972_v40 = vmul.f32 0.6931472, %v1367_v38  ;;  %v1007_v47 = vsub.f32 %v975_v37, %v1000_v35 }
 0x6ba   : > { %v970_v41 = vmul.f32 0.6931472, %v1369_v39  ;;  %v1006_v54 = vpop.xlane.xlu1 %1005 }
 0x6bb   : > { %v977_v43 = vadd.f32 %v972_v40, %v944_v0  ;;  %v1011_v44 = vadd.f32 %v1007_v47, %v1646_v3 }
 0x6bc   : > { %v1371_v45 = vpop.eup %1370  ;;  %v976_v48 = vadd.f32 %v970_v41, %v942_v10 }
 0x6bd   : > { %v974_v49 = vmul.f32 0.6931472, %v1371_v45  ;;  %v1009_v50 = vsub.f32 %v977_v43, %v1004_v46  ;;  %1016 = vst.msk [vmem:[%s1607_s13] sm:$0xff] %vm1015_vm15, %v1011_v44 }
 0x6be   : > { %v1008_v4 = vsub.f32 %v976_v48, %v1002_v42 }
 0x6bf   : > { %v1013_v51 = vadd.f32 %v1009_v50, %v1648_v13  ;;  %v978_v52 = vadd.f32 %v974_v49, %v1704_v6 }
 0x6c0   : > { %v1012_v53 = vadd.f32 %v1008_v4, %v1650_v14 }
 0x6c1   : > { %1018 = vst.msk [vmem:[%s1607_s13 + $0x10] sm:$0xff] %vm1015_vm15, %v1013_v51  ;;  %v1010_v55 = vsub.f32 %v978_v52, %v1006_v54 }
 0x6c2   : > { %1017 = vst.msk [vmem:[%s1607_s13 + $0x8] sm:$0xff] %vm1015_vm15, %v1012_v53 }
 0x6c3   : > { %v1014_v3 = vadd.f32 %v1010_v55, %v1653_v17 }
 0x6c5   : > { %1019 = vst.msk [vmem:[%s1607_s13 + $0x18] sm:$0xff] %vm1015_vm15, %v1014_v3 }
 0x6c6 PF: > { %s27_s14 = sadd.s32 1, %s1452_s14  }
 0x6c7   : > { %p24_p3 = scmp.ge.s32.totalorder %s27_s14, 9  }
 0x6c9   :  { %26 = sbr.rel (!%p24_p3) target bundleno = 17 (0x11), region = 106 }
 0x6ce   :  { %1042 = vsyncpa [#allocation5], 1 }
 0x6cf   :  { %1044 = vsyncpa [#allocation5 + $0x1], 1 }
 0x6d0   :  { %1045 = vsyncpa [#allocation7], 1 }

// kernel: tpu_custom_call.1
= control target key start
LH: loop header
LB: loop body
LE: loop exit
PB: predicated region body
PF: predicated region fallthrough
CT: control target
= control target key end

     0   :  { %s1727_s0 = inlined_call_operand.vmem [shape: s32[7], index: 0, kind: input, shape index: {}]   ;;  %s1728_s1 = inlined_call_operand.vmem [shape: bf16[224,128], index: 1, kind: input, shape index: {}]   ;;  %s1729_s2 = inlined_call_operand.vmem [shape: s32[224,1], index: 2, kind: input, shape index: {}]   ;;  %s1730_s3 = inlined_call_operand.vmem [shape: bf16[128,128], index: 3, kind: input, shape index: {}]   ;;  %s1731_s4 = inlined_call_operand.vmem [shape: f32[1,128], index: 4, kind: input, shape index: {}]   ;;  %s1732_s5 = inlined_call_operand.hbm [shape: bf16[128,128], index: 5, kind: input, shape index: {}]   ;;  %s1733_s6 = inlined_call_operand.vmem [shape: f32[1,128], index: 6, kind: input, shape index: {}]   ;;  %s1734_s7 = inlined_call_operand.hbm [shape: bf16[128,128], index: 7, kind: input, shape index: {}]   ;;  %s1735_s8 = inlined_call_operand.vmem [shape: f32[1,128], index: 8, kind: input, shape index: {}]   ;;  %s1736_s9 = inlined_call_operand.vmem [shape: f32[224,1], index: 9, kind: output, shape index: {}]  }
   0x1   :  { %s14_s11 = sshll.u32 %s1727_s0, 4  ;;  %s15_s11 = int_to_ptr.vmem [resolvable:$true] %s14_s11 }
   0x2   :  { %s1372_s12 = scalar_lea.vmem %s15_s11, 16  ;;  %p1377_p1 = scmp.lt.s32.totalorder %s15_s11, %s15_s11 }
   0x3   :  { %p1373_p0 = scmp.ne.s32.totalorder %s15_s11, %s1372_s12  ;;  %p1378_p2 = scmp.lt.s32.totalorder %s1372_s12, %s1372_s12 }
   0x5   :  { %p1379_p3 = por %p1378_p2, %p1377_p1 }
   0x7   :  { %p1380_p4 = pnand %p1379_p3, %p1373_p0 }
   0x9   :  { %1383 = shalt.err (!%p1380_p4)  }
   0xa   :  { %s1454_s13 = smov [#allocation3]  }
   0xb   :  { %17 = dma.vmem_to_smem %s15_s11, 16, %s1454_s13, [#allocation2] }
   0xc   :  { %1440 = dma.done.wait [#allocation2], 16 }
   0xd   :  { %1441 = vsyncadd [#allocation2], 4294967280 }
   0xe   :  { %19 = sfence }
   0xf   :  { %20 = vsyncpa [#allocation5], 0 }
  0x10   :  { %21 = vsyncpa [#allocation7], 0  ;;  %s1515_s14 = smov 0  }
  0x11 LB: > { %s1521_s0 = sadd.s32 4294967295, %s1452_s14   ;;  %p1112_p5 = scmp.ge.s32.totalorder %s1452_s14, 1  ;;  %s1452_s14 = sphi %s1515_s14, %s27_s14  }
  0x12   : > { %p236_p6 = scmp.lt.s32.totalorder %s1452_s14, 8  ;;  %s1455_s15 = smov [#allocation4]  }
  0x13   : > { %s254_s16 = sshll.u32 %s1455_s15, 4  ;;  %p1272_p8 = scmp.eq.s32.totalorder %s1521_s0, 0  ;;  %s255_s16 = int_to_ptr.vmem [resolvable:$true] %s254_s16 }
  0x14   : > { %p1525_p7 = pnand %p1112_p5, %p236_p6  ;;  %s1456_s18 = smov [#allocation6]  }
  0x15   : > { %s270_s19 = sshll.u32 %s1456_s18, 4  ;;  %s1395_s21 = scalar_lea.vmem %s255_s16, 1024  ;;  %s271_s19 = int_to_ptr.vmem [resolvable:$true] %s270_s19 }
  0x16   : > { %p1265_p9 = pneg %p1525_p7  ;;  %p1396_p12 = scmp.ne.s32.totalorder %s255_s16, %s1395_s21 }
  0x17   : > { %p1403_p1 = scmp.lt.s32.totalorder %s255_s16, %s255_s16  ;;  %p1404_p2 = scmp.lt.s32.totalorder %s1395_s21, %s1395_s21 }
  0x18   : > { %p1534_p10 = pnand %p1272_p8, %p1265_p9 }
  0x19   : > { %p1405_p3 = por %p1404_p2, %p1403_p1 }
  0x1a   : > { %p1386_p11 = pneg %p1534_p10 }
  0x1c   : > { %p1398_p13 = pnand %p1396_p12, %p1386_p11 }
  0x1e   : > { %p1399_p0 = pneg %p1398_p13 }
  0x20   : > { %p1406_p4 = pnand %p1405_p3, %p1399_p0 }
  0x22   : > { %1409 = shalt.err (!%p1406_p4)
}
  0x23   : > { %s1457_s22 = smov 64   ;;  %s1458_s23 = smov 4  }
  0x24   : > { %1268 = dma.hbm_to_vmem [thread:$0]  (!%p1534_p10), %s1732_s5, 1024, %s255_s16, [#allocation5], %s1457_s22, %s1457_s22, %s1458_s23  }
  0x25   : > { %s1421_s26 = scalar_lea.vmem %s271_s19, 1024  ;;  %p1429_p12 = scmp.lt.s32.totalorder %s271_s19, %s271_s19 }
  0x26   : > { %p1422_p5 = scmp.ne.s32.totalorder %s271_s19, %s1421_s26  ;;  %p1430_p13 = scmp.lt.s32.totalorder %s1421_s26, %s1421_s26 }
  0x28   : > { %p1424_p6 = pnand %p1422_p5, %p1386_p11  ;;  %p1431_p1 = por %p1430_p13, %p1429_p12 }
  0x2a   : > { %p1425_p9 = pneg %p1424_p6 }
  0x2c   : > { %p1432_p0 = pnand %p1431_p1, %p1425_p9 }
  0x2e   : > { %1435 = shalt.err (!%p1432_p0)
}
  0x2f   : > { %1271 = dma.hbm_to_vmem [thread:$0]  (!%p1534_p10), %s1734_s7, 1024, %s271_s19, [#allocation7], %s1457_s22, %s1457_s22, %s1458_s23  }
  0x30   : > { %307 = sbr.rel (%p1525_p7) target bundleno = 1734 (0x6c6), region = 52 }
  0x35   : > { %1443 = dma.done.wait (%p1272_p8), [#allocation5], 1024  }
  0x36   : > { %1445 = vsyncadd (%p1272_p8), [#allocation5], 4294966272 }
  0x37   : > { %1447 = dma.done.wait (%p1272_p8), [#allocation7], 1024  }
  0x38   : > { %1449 = vsyncadd (%p1272_p8), [#allocation7], 4294966272  ;;  %s1119_s29 = sshll.u32 %s1521_s0, 2  ;;  %v1294_v0 = vld [vmem:[%s1730_s3 + $0x38] sm:$0xff]   ;;  %v1295_v1 = vld [vmem:[%s1730_s3 + $0x30] sm:$0xff]   ;;  %v1459_v10 = vmov 0   ;;  %v560_v43 = vlaneseq }
  0x39   : > { %p351_p11 = scmp.lt.s32.totalorder %s1119_s29, 27  ;;  %1197 = vmatprep.subr.bf16.mxu0 %v1294_v0  ;;  %v1296_v2 = vld [vmem:[%s1730_s3 + $0x28] sm:$0xff]   ;;  %v1297_v3 = vld [vmem:[%s1730_s3 + $0x20] sm:$0xff]   ;;  %v1298_v5 = vld [vmem:[%s1730_s3 + $0x18] sm:$0xff]   ;;  %1293 = vset.pattern.permute.xlu1 %v1459_v10  ;;  %s1613_s17 = sld [smem:[#allocation3 + %s1521_s0]] }
  0x3a   : > { %1198 = vmatpush3.bf16.msra.mxu0 %v1294_v0  ;;  %v1299_v6 = vld [vmem:[%s1730_s3 + $0x10] sm:$0xff]   ;;  %v1300_v7 = vld [vmem:[%s1730_s3 + $0x8] sm:$0xff]   ;;  %v1301_v8 = vld [vmem:[%s1730_s3] sm:$0xff]   ;;  %1292 = vset.pattern.permute.xlu0 %v1459_v10  ;;  %v1639_v47 = vand.u32 127, %v560_v43 }
  0x3b   : > { %s1740_s29 = smov (!%p351_p11, %s1119_s29), 27  ;;  %1199 = vmatprep.subr.bf16.mxu0 %v1295_v1  ;;  %v1125_v11 = vld [vmem:[%s1731_s4] ss:$0 sm:$0xff] }
  0x3c   : > { %s1120_s13 = sshll.u32 %s1740_s29, 2  ;;  %s1122_s10 = sshll.u32 %s1740_s29, 3 }
  0x3d   : > { %s354_s19 = scalar_lea.vmem %s1728_s1, %s1120_s13  ;;  %s1607_s13 = scalar_lea.vmem %s1736_s9, %s1122_s10 }
  0x3e   : > { %1200 = vmatpush3.bf16.msra.mxu0 %v1295_v1  ;;  %v1585_v4 = vld [vmem:[%s354_s19] sm:$0xff]   ;;  %v1600_v9 = vld [vmem:[%s354_s19 + $0x8] sm:$0xff]   ;;  %s360_s19 = scalar_lea.vmem %s1729_s2, %s1122_s10 }
  0x3f   : > { %1201 = vmatprep.subr.bf16.mxu0 %v1296_v2  ;;  %1213 = vmatprep.mubr.bf16.mxu0 %v1585_v4  ;;  %p378_p7 = scmp.eq.s32.totalorder %s1613_s17, 0  ;;  %s379_s20 = ssub.s32 18, %s1613_s17  ;;  %v1623_v21 = vld [vmem:[%s360_s19 + $0x8] sm:$0xff]  ;;  %v1626_v24 = vld [vmem:[%s360_s19 + $0x10] sm:$0xff]  ;;  %v1629_v26 = vld [vmem:[%s360_s19] sm:$0xff] }
  0x40   : > { %v380_v22 = vstv %s379_s20  ;;  %v1631_v27 = vld [vmem:[%s360_s19 + $0x18] sm:$0xff]  ;;  %p1136_p8 = scmp.ne.s32.totalorder %s1613_s17, 0 }
  0x41   : > { %s381_s29 = scalar_select %p378_p7, 1, 0 }
  0x42   : > { %1202 = vmatpush3.bf16.msra.mxu0 %v1296_v2 }
  0x43   : > { %1203 = vmatprep.subr.bf16.mxu0 %v1297_v3  ;;  %v382_v20 = vstv %s381_s29 }
  0x44   : > { %vm383_vm0 = vcmp.eq.s32.totalorder %v382_v20, 1 }
  0x45   : > { %v385_v23 = vsel %vm383_vm0, %v1623_v21, %v380_v22  ;;  %v386_v25 = vsel %vm383_vm0, %v1626_v24, %v380_v22  ;;  %v384_v28 = vsel %vm383_vm0, %v1629_v26, %v380_v22  ;;  %v387_v29 = vsel %vm383_vm0, %v1631_v27, %v380_v22 }
  0x46   : > { %1204 = vmatpush3.bf16.msra.mxu0 %v1297_v3 }
  0x47   : > { %1205 = vmatprep.subr.bf16.mxu0 %v1298_v5 }
  0x4a   : > { %1206 = vmatpush3.bf16.msra.mxu0 %v1298_v5 }
  0x4b   : > { %1207 = vmatprep.subr.bf16.mxu0 %v1299_v6 }
  0x4e   : > { %1208 = vmatpush3.bf16.msra.mxu0 %v1299_v6 }
  0x4f   : > { %1209 = vmatprep.subr.bf16.mxu0 %v1300_v7 }
  0x52   : > { %1210 = vmatpush3.bf16.msra.mxu0 %v1300_v7 }
  0x53   : > { %1211 = vmatprep.subr.bf16.mxu0 %v1301_v8 }
  0x56   : > { %1212 = vmatpush3.bf16.msra.mxu0 %v1301_v8 }
  0x59   : > { %1214 = vmatmul.mubr.bf16.vlgmr.msra.gmra.mxu0 %v1600_v9 }
 0x119   : > { %v1215_v12 = vpop.f32.mrf.mxu0 }
 0x11a   : > { %v514_v13 = vadd.f32 %v1215_v12, %v1125_v11 }
 0x11b   : > { %v505_v14 = vpop.f32.mrf.mxu0 }
 0x11c   : > { %v506_v15 = vadd.f32 %v1125_v11, %v505_v14  ;;  %524 = vmax.xlane.f32.xlu1 %v514_v13 }
 0x11d   : > { %v1216_v16 = vpop.f32.mrf.mxu0 }
 0x11e   : > { %v1615_v17 = vadd.f32 %v1216_v16, %v1125_v11  ;;  %520 = vmax.xlane.f32.xlu0 %v506_v15 }
 0x11f   : > { %v508_v18 = vpop.f32.mrf.mxu0 }
 0x120   : > { %v509_v19 = vadd.f32 %v1125_v11, %v508_v18  ;;  %526 = vmax.xlane.f32.xlu1 %v1615_v17 }
 0x122   : > { %522 = vmax.xlane.f32.xlu0 %v509_v19 }
 0x131   : > { %566 = vperm.xlu1 %1293, %v385_v23  }
 0x135   : > { %569 = vperm.xlu1 %1293, %v386_v25  }
 0x138   : > { %563 = vperm.xlu0 %1292, %v384_v28  }
 0x139   : > { %572 = vperm.xlu1 %1293, %v387_v29  }
 0x1a5   : > { %v525_v30 = vpop.xlane.xlu1 %524 }
 0x1a6   : > { %v530_v31 = vsub.f32 %v514_v13, %v525_v30 }
 0x1a7   : > { %v521_v32 = vpop.xlane.xlu0 %520 }
 0x1a8   : > { %v528_v33 = vsub.f32 %v506_v15, %v521_v32  ;;  %v536_v36 = vmul.f32 1.442695, %v530_v31 }
 0x1a9   : > { %v1635_v34 = vpop.xlane.xlu1 %526 }
 0x1aa   : > { %v532_v35 = vmul.f32 1.442695, %v528_v33  ;;  %v531_v38 = vsub.f32 %v1615_v17, %v1635_v34 }
 0x1ab   : > { %v523_v37 = vpop.xlane.xlu0 %522 }
 0x1ac   : > { %1304 = vpow2.f32 %v532_v35  ;;  %v529_v39 = vsub.f32 %v509_v19, %v523_v37  ;;  %v538_v41 = vmul.f32 1.442695, %v531_v38 }
 0x1ad   : > { %1306 = vpow2.f32 %v536_v36  ;;  %v567_v42 = vpop.permute.xlu1 %566 }
 0x1ae   : > { %v534_v40 = vmul.f32 1.442695, %v529_v39  ;;  %vm575_vm3 = vcmp.eq.s32.totalorder %v1639_v47, %v567_v42 }
 0x1af   : > { %v579_v54 = vsel %vm575_vm3, %v509_v19, 0.0 }
 0x1b0   : > { %1308 = vpow2.f32 %v534_v40 }
 0x1b1   : > { %1310 = vpow2.f32 %v538_v41  ;;  %v570_v45 = vpop.permute.xlu1 %569 }
 0x1b2   : > { %vm576_vm1 = vcmp.eq.s32.totalorder %v1639_v47, %v570_v45 }
 0x1b3   : > { %v564_v49 = vpop.permute.xlu0 %563  ;;  %v580_v51 = vsel %vm576_vm1, %v514_v13, 0.0 }
 0x1b4   : > { %vm574_vm2 = vcmp.eq.s32.totalorder %v1639_v47, %v564_v49 }
 0x1b5   : > { %v578_v52 = vsel %vm574_vm2, %v506_v15, 0.0  ;;  %v573_v53 = vpop.permute.xlu1 %572 }
 0x1b6   : > { %vm577_vm4 = vcmp.eq.s32.totalorder %v1639_v47, %v573_v53 }
 0x1b7   : > { %v581_v55 = vsel %vm577_vm4, %v1615_v17, 0.0 }
 0x1b9   : > { %v1305_v44 = vpop.eup %1304 }
 0x1ba   : > { %540 = vadd.xlane.f32.xlu1 %v1305_v44  ;;  %v1307_v46 = vpop.eup %1306 }
 0x1bd   : > { %v1309_v48 = vpop.eup %1308 }
 0x1be   : > { %544 = vadd.xlane.f32.xlu1 %v1307_v46  ;;  %542 = vadd.xlane.f32.xlu0 %v1309_v48  ;;  %v1311_v50 = vpop.eup %1310 }
 0x1c2   : > { %546 = vadd.xlane.f32.xlu1 %v1311_v50  ;;  %586 = vadd.xlane.f32.xlu0 %v580_v51 }
 0x1c6   : > { %582 = vadd.xlane.f32.xlu1 %v578_v52 }
 0x1ca   : > { %584 = vadd.xlane.f32.xlu1 %v579_v54 }
 0x1ce   : > { %588 = vadd.xlane.f32.xlu1 %v581_v55 }
 0x243   : > { %v541_v56 = vpop.xlane.xlu1 %540 }
 0x244   : > { %1312 = vlog2.f32 %v541_v56 }
 0x247   : > { %v545_v57 = vpop.xlane.xlu1 %544  ;;  %v543_v58 = vpop.xlane.xlu0 %542 }
 0x248   : > { %1314 = vlog2.f32 %v545_v57 }
 0x249   : > { %1316 = vlog2.f32 %v543_v58 }
 0x24b   : > { %v547_v59 = vpop.xlane.xlu1 %546  ;;  %v587_v10 = vpop.xlane.xlu0 %586 }
 0x24c   : > { %1318 = vlog2.f32 %v547_v59 }
 0x24f   : > { %v583_v61 = vpop.xlane.xlu1 %582 }
 0x251   : > { %v1313_v60 = vpop.eup %1312 }
 0x252   : > { %v549_v62 = vmul.f32 0.6931472, %v1313_v60 }
 0x253   : > { %v585_v6 = vpop.xlane.xlu1 %584 }
 0x254   : > { %v556_v63 = vadd.f32 %v549_v62, %v521_v32 }
 0x255   : > { %v1315_v0 = vpop.eup %1314 }
 0x256   : > { %v1317_v1 = vpop.eup %1316  ;;  %v553_v2 = vmul.f32 0.6931472, %v1315_v0  ;;  %v1646_v3 = vsub.f32 %v556_v63, %v583_v61 }
 0x257   : > { %v551_v5 = vmul.f32 0.6931472, %v1317_v1  ;;  %v589_v16 = vpop.xlane.xlu1 %588 }
 0x258   : > { %v558_v7 = vadd.f32 %v553_v2, %v525_v30 }
 0x259   : > { %v1319_v8 = vpop.eup %1318  ;;  %v557_v11 = vadd.f32 %v551_v5, %v523_v37 }
 0x25a   : > { %v555_v12 = vmul.f32 0.6931472, %v1319_v8  ;;  %v1648_v13 = vsub.f32 %v558_v7, %v587_v10  ;;  %596 = sbr.rel (%p1136_p8) target bundleno = 610 (0x262), region = 64 }
 0x25b   : > { %v1650_v14 = vsub.f32 %v557_v11, %v585_v6 }
 0x25c   : > { %v559_v15 = vadd.f32 %v555_v12, %v1635_v34 }
 0x25e   : > { %v1653_v17 = vsub.f32 %v559_v15, %v589_v16 }
 0x25f   : > { %vm597_vm5 = vcmask 7168  }
 0x260   : > { %598 = vst.msk [vmem:[%s1607_s13] sm:$0xff] %vm597_vm5, %v1646_v3  ;;  %599 = vst.msk [vmem:[%s1607_s13 + $0x8] sm:$0xff] %vm597_vm5, %v1650_v14 }
 0x261   : > { %600 = vst.msk [vmem:[%s1607_s13 + $0x10] sm:$0xff] %vm597_vm5, %v1648_v13  ;;  %601 = vst.msk [vmem:[%s1607_s13 + $0x18] sm:$0xff] %vm597_vm5, %v1653_v17 }
 0x262 PF: > { %p1137_p10 = scmp.ne.s32.totalorder %s1613_s17, 1 }
 0x264   : > { %605 = sbr.rel (%p1137_p10) target bundleno = 1172 (0x494), region = 68 }
 0x269   : > { %v1322_v18 = vld [vmem:[#allocation4 + $0x38] sm:$0xff]   ;;  %1233 = vmatprep.mubr.bf16.mxu0 %v1585_v4  ;;  %v1323_v19 = vld [vmem:[#allocation4 + $0x30] sm:$0xff]   ;;  %v1324_v20 = vld [vmem:[#allocation4 + $0x28] sm:$0xff]   ;;  %v1460_v30 = vmov 0   ;;  %v1139_v40 = vadd.s32 4294967280, %v1623_v21  ;;  %v1140_v41 = vadd.s32 4294967280, %v1626_v24 }
 0x26a   : > { %1217 = vmatprep.subr.bf16.mxu0 %v1322_v18  ;;  %v1325_v22 = vld [vmem:[#allocation4 + $0x20] sm:$0xff]   ;;  %v1326_v23 = vld [vmem:[#allocation4 + $0x18] sm:$0xff]   ;;  %v1327_v25 = vld [vmem:[#allocation4 + $0x10] sm:$0xff]   ;;  %1321 = vset.pattern.permute.xlu1 %v1460_v30  ;;  %v1138_v42 = vadd.s32 4294967280, %v1629_v26  ;;  %v1141_v43 = vadd.s32 4294967280, %v1631_v27  ;;  %vm806_vm10 = vcmask 7168  }
 0x26b   : > { %1218 = vmatpush3.bf16.msra.mxu0 %v1322_v18  ;;  %v1328_v28 = vld [vmem:[#allocation4 + $0x8] sm:$0xff]   ;;  %v1329_v29 = vld [vmem:[#allocation4] sm:$0xff]   ;;  %1320 = vset.pattern.permute.xlu0 %v1460_v30 }
 0x26c   : > { %1219 = vmatprep.subr.bf16.mxu0 %v1323_v19  ;;  %v1142_v31 = vld [vmem:[%s1733_s6] ss:$0 sm:$0xff] }
 0x26f   : > { %1220 = vmatpush3.bf16.msra.mxu0 %v1323_v19 }
 0x270   : > { %1221 = vmatprep.subr.bf16.mxu0 %v1324_v20 }
 0x273   : > { %1222 = vmatpush3.bf16.msra.mxu0 %v1324_v20 }
 0x274   : > { %1223 = vmatprep.subr.bf16.mxu0 %v1325_v22 }
 0x277   : > { %1224 = vmatpush3.bf16.msra.mxu0 %v1325_v22 }
 0x278   : > { %1225 = vmatprep.subr.bf16.mxu0 %v1326_v23 }
 0x27b   : > { %1226 = vmatpush3.bf16.msra.mxu0 %v1326_v23 }
 0x27c   : > { %1227 = vmatprep.subr.bf16.mxu0 %v1327_v25 }
 0x27f   : > { %1228 = vmatpush3.bf16.msra.mxu0 %v1327_v25 }
 0x280   : > { %1229 = vmatprep.subr.bf16.mxu0 %v1328_v28 }
 0x283   : > { %1230 = vmatpush3.bf16.msra.mxu0 %v1328_v28 }
 0x284   : > { %1231 = vmatprep.subr.bf16.mxu0 %v1329_v29 }
 0x287   : > { %1232 = vmatpush3.bf16.msra.mxu0 %v1329_v29 }
 0x28a   : > { %1234 = vmatmul.mubr.bf16.vlgmr.msra.gmra.mxu0 %v1600_v9 }
 0x34a   : > { %v1235_v32 = vpop.f32.mrf.mxu0 }
 0x34b   : > { %v724_v33 = vadd.f32 %v1235_v32, %v1142_v31 }
 0x34c   : > { %v715_v34 = vpop.f32.mrf.mxu0 }
 0x34d   : > { %v716_v35 = vadd.f32 %v1142_v31, %v715_v34  ;;  %734 = vmax.xlane.f32.xlu1 %v724_v33 }
 0x34e   : > { %v1236_v36 = vpop.f32.mrf.mxu0 }
 0x34f   : > { %v727_v37 = vadd.f32 %v1236_v36, %v1142_v31  ;;  %730 = vmax.xlane.f32.xlu0 %v716_v35 }
 0x350   : > { %v718_v38 = vpop.f32.mrf.mxu0 }
 0x351   : > { %v719_v39 = vadd.f32 %v1142_v31, %v718_v38  ;;  %736 = vmax.xlane.f32.xlu1 %v727_v37 }
 0x353   : > { %732 = vmax.xlane.f32.xlu0 %v719_v39 }
 0x362   : > { %774 = vperm.xlu1 %1321, %v1139_v40  }
 0x366   : > { %777 = vperm.xlu1 %1321, %v1140_v41  }
 0x369   : > { %771 = vperm.xlu0 %1320, %v1138_v42  }
 0x36a   : > { %780 = vperm.xlu1 %1321, %v1141_v43  }
 0x3d6   : > { %v735_v44 = vpop.xlane.xlu1 %734 }
 0x3d7   : > { %v740_v45 = vsub.f32 %v724_v33, %v735_v44 }
 0x3d8   : > { %v731_v46 = vpop.xlane.xlu0 %730 }
 0x3d9   : > { %v738_v48 = vsub.f32 %v716_v35, %v731_v46  ;;  %v746_v51 = vmul.f32 1.442695, %v740_v45 }
 0x3da   : > { %v1674_v49 = vpop.xlane.xlu1 %736 }
 0x3db   : > { %v742_v50 = vmul.f32 1.442695, %v738_v48  ;;  %v741_v53 = vsub.f32 %v727_v37, %v1674_v49 }
 0x3dc   : > { %v733_v52 = vpop.xlane.xlu0 %732 }
 0x3dd   : > { %1330 = vpow2.f32 %v742_v50  ;;  %v739_v54 = vsub.f32 %v719_v39, %v733_v52  ;;  %v748_v56 = vmul.f32 1.442695, %v741_v53 }
 0x3de   : > { %1332 = vpow2.f32 %v746_v51  ;;  %v775_v57 = vpop.permute.xlu1 %774 }
 0x3df   : > { %v744_v55 = vmul.f32 1.442695, %v739_v54  ;;  %vm783_vm8 = vcmp.eq.s32.totalorder %v1639_v47, %v775_v57 }
 0x3e0   : > { %v787_v5 = vsel %vm783_vm8, %v719_v39, 0.0 }
 0x3e1   : > { %1334 = vpow2.f32 %v744_v55 }
 0x3e2   : > { %1336 = vpow2.f32 %v748_v56  ;;  %v778_v59 = vpop.permute.xlu1 %777 }
 0x3e3   : > { %vm784_vm6 = vcmp.eq.s32.totalorder %v1639_v47, %v778_v59 }
 0x3e4   : > { %v772_v62 = vpop.permute.xlu0 %771  ;;  %v788_v0 = vsel %vm784_vm6, %v724_v33, 0.0 }
 0x3e5   : > { %vm782_vm7 = vcmp.eq.s32.totalorder %v1639_v47, %v772_v62 }
 0x3e6   : > { %v786_v1 = vsel %vm782_vm7, %v716_v35, 0.0  ;;  %v781_v2 = vpop.permute.xlu1 %780 }
 0x3e7   : > { %vm785_vm9 = vcmp.eq.s32.totalorder %v1639_v47, %v781_v2 }
 0x3e8   : > { %v789_v6 = vsel %vm785_vm9, %v727_v37, 0.0 }
 0x3ea   : > { %v1331_v58 = vpop.eup %1330 }
 0x3eb   : > { %750 = vadd.xlane.f32.xlu1 %v1331_v58  ;;  %v1333_v60 = vpop.eup %1332 }
 0x3ee   : > { %v1335_v61 = vpop.eup %1334 }
 0x3ef   : > { %754 = vadd.xlane.f32.xlu1 %v1333_v60  ;;  %752 = vadd.xlane.f32.xlu0 %v1335_v61  ;;  %v1337_v63 = vpop.eup %1336 }
 0x3f3   : > { %756 = vadd.xlane.f32.xlu1 %v1337_v63  ;;  %794 = vadd.xlane.f32.xlu0 %v788_v0 }
 0x3f7   : > { %790 = vadd.xlane.f32.xlu1 %v786_v1 }
 0x3fb   : > { %792 = vadd.xlane.f32.xlu1 %v787_v5 }
 0x3ff   : > { %796 = vadd.xlane.f32.xlu1 %v789_v6 }
 0x474   : > { %v751_v7 = vpop.xlane.xlu1 %750 }
 0x475   : > { %1338 = vlog2.f32 %v751_v7 }
 0x478   : > { %v755_v8 = vpop.xlane.xlu1 %754  ;;  %v753_v10 = vpop.xlane.xlu0 %752 }
 0x479   : > { %1340 = vlog2.f32 %v755_v8 }
 0x47a   : > { %1342 = vlog2.f32 %v753_v10 }
 0x47c   : > { %v757_v11 = vpop.xlane.xlu1 %756  ;;  %v795_v32 = vpop.xlane.xlu0 %794 }
 0x47d   : > { %1344 = vlog2.f32 %v757_v11 }
 0x480   : > { %v791_v15 = vpop.xlane.xlu1 %790 }
 0x482   : > { %v1339_v12 = vpop.eup %1338 }
 0x483   : > { %v759_v16 = vmul.f32 0.6931472, %v1339_v12 }
 0x484   : > { %v793_v28 = vpop.xlane.xlu1 %792 }
 0x485   : > { %v766_v18 = vadd.f32 %v759_v16, %v731_v46 }
 0x486   : > { %v1341_v19 = vpop.eup %1340 }
 0x487   : > { %v1343_v20 = vpop.eup %1342  ;;  %v763_v22 = vmul.f32 0.6931472, %v1341_v19  ;;  %v798_v23 = vsub.f32 %v766_v18, %v791_v15 }
 0x488   : > { %v761_v25 = vmul.f32 0.6931472, %v1343_v20  ;;  %v797_v40 = vpop.xlane.xlu1 %796 }
 0x489   : > { %v768_v29 = vadd.f32 %v763_v22, %v735_v44  ;;  %v802_v30 = vadd.f32 %v798_v23, %v1646_v3 }
 0x48a   : > { %v1345_v31 = vpop.eup %1344  ;;  %v767_v33 = vadd.f32 %v761_v25, %v733_v52 }
 0x48b   : > { %v765_v34 = vmul.f32 0.6931472, %v1345_v31  ;;  %v800_v35 = vsub.f32 %v768_v29, %v795_v32  ;;  %807 = vst.msk [vmem:[%s1607_s13] sm:$0xff] %vm806_vm10, %v802_v30 }
 0x48c   : > { %v799_v36 = vsub.f32 %v767_v33, %v793_v28 }
 0x48d   : > { %v804_v37 = vadd.f32 %v800_v35, %v1648_v13  ;;  %v769_v38 = vadd.f32 %v765_v34, %v1674_v49 }
 0x48e   : > { %v803_v39 = vadd.f32 %v799_v36, %v1650_v14 }
 0x48f   : > { %809 = vst.msk [vmem:[%s1607_s13 + $0x10] sm:$0xff] %vm806_vm10, %v804_v37  ;;  %v801_v41 = vsub.f32 %v769_v38, %v797_v40 }
 0x490   : > { %808 = vst.msk [vmem:[%s1607_s13 + $0x8] sm:$0xff] %vm806_vm10, %v803_v39 }
 0x491   : > { %v805_v42 = vadd.f32 %v801_v41, %v1653_v17 }
 0x493   : > { %810 = vst.msk [vmem:[%s1607_s13 + $0x18] sm:$0xff] %vm806_vm10, %v805_v42 }
 0x494 PF: > { %p1151_p2 = scmp.ne.s32.totalorder %s1613_s17, 2 }
 0x496   : > { %814 = sbr.rel (%p1151_p2) target bundleno = 1734 (0x6c6), region = 72 }
 0x49b   : > { %v1348_v43 = vld [vmem:[#allocation6 + $0x38] sm:$0xff]   ;;  %1253 = vmatprep.mubr.bf16.mxu0 %v1585_v4  ;;  %v1349_v44 = vld [vmem:[#allocation6 + $0x30] sm:$0xff]   ;;  %v1350_v45 = vld [vmem:[#allocation6 + $0x28] sm:$0xff]   ;;  %v1461_v51 = vmov 0   ;;  %v1154_v61 = vadd.s32 4294967264, %v1626_v24  ;;  %v1152_v62 = vadd.s32 4294967264, %v1629_v26 }
 0x49c   : > { %1237 = vmatprep.subr.bf16.mxu0 %v1348_v43  ;;  %v1351_v46 = vld [vmem:[#allocation6 + $0x20] sm:$0xff]   ;;  %v1352_v48 = vld [vmem:[#allocation6 + $0x18] sm:$0xff]   ;;  %v1353_v49 = vld [vmem:[#allocation6 + $0x10] sm:$0xff]   ;;  %1347 = vset.pattern.permute.xlu1 %v1461_v51  ;;  %v1155_v63 = vadd.s32 4294967264, %v1631_v27  ;;  %vm1015_vm15 = vcmask 7168  }
 0x49d   : > { %1238 = vmatpush3.bf16.msra.mxu0 %v1348_v43  ;;  %v1354_v50 = vld [vmem:[#allocation6 + $0x8] sm:$0xff]   ;;  %v1355_v4 = vld [vmem:[#allocation6] sm:$0xff]   ;;  %1346 = vset.pattern.permute.xlu0 %v1461_v51 }
 0x49e   : > { %1239 = vmatprep.subr.bf16.mxu0 %v1349_v44  ;;  %v1156_v52 = vld [vmem:[%s1735_s8] ss:$0 sm:$0xff] }
 0x4a1   : > { %1240 = vmatpush3.bf16.msra.mxu0 %v1349_v44 }
 0x4a2   : > { %1241 = vmatprep.subr.bf16.mxu0 %v1350_v45 }
 0x4a5   : > { %1242 = vmatpush3.bf16.msra.mxu0 %v1350_v45 }
 0x4a6   : > { %1243 = vmatprep.subr.bf16.mxu0 %v1351_v46 }
 0x4a9   : > { %1244 = vmatpush3.bf16.msra.mxu0 %v1351_v46 }
 0x4aa   : > { %1245 = vmatprep.subr.bf16.mxu0 %v1352_v48 }
 0x4ad   : > { %1246 = vmatpush3.bf16.msra.mxu0 %v1352_v48 }
 0x4ae   : > { %1247 = vmatprep.subr.bf16.mxu0 %v1353_v49 }
 0x4b1   : > { %1248 = vmatpush3.bf16.msra.mxu0 %v1353_v49 }
 0x4b2   : > { %1249 = vmatprep.subr.bf16.mxu0 %v1354_v50 }
 0x4b5   : > { %1250 = vmatpush3.bf16.msra.mxu0 %v1354_v50 }
 0x4b6   : > { %1251 = vmatprep.subr.bf16.mxu0 %v1355_v4 }
 0x4b9   : > { %1252 = vmatpush3.bf16.msra.mxu0 %v1355_v4 }
 0x4bc   : > { %1254 = vmatmul.mubr.bf16.vlgmr.msra.gmra.mxu0 %v1600_v9  ;;  %v1153_v9 = vadd.s32 4294967264, %v1623_v21 }
 0x57c   : > { %v1255_v53 = vpop.f32.mrf.mxu0 }
 0x57d   : > { %v933_v54 = vadd.f32 %v1255_v53, %v1156_v52 }
 0x57e   : > { %v924_v55 = vpop.f32.mrf.mxu0 }
 0x57f   : > { %v925_v56 = vadd.f32 %v1156_v52, %v924_v55  ;;  %943 = vmax.xlane.f32.xlu1 %v933_v54 }
 0x580   : > { %v1256_v57 = vpop.f32.mrf.mxu0 }
 0x581   : > { %v936_v58 = vadd.f32 %v1256_v57, %v1156_v52  ;;  %939 = vmax.xlane.f32.xlu0 %v925_v56 }
 0x582   : > { %v927_v59 = vpop.f32.mrf.mxu0 }
 0x583   : > { %v928_v60 = vadd.f32 %v1156_v52, %v927_v59  ;;  %945 = vmax.xlane.f32.xlu1 %v936_v58 }
 0x585   : > { %941 = vmax.xlane.f32.xlu0 %v928_v60 }
 0x594   : > { %983 = vperm.xlu1 %1347, %v1153_v9  }
 0x598   : > { %986 = vperm.xlu1 %1347, %v1154_v61  }
 0x59b   : > { %980 = vperm.xlu0 %1346, %v1152_v62  }
 0x59c   : > { %989 = vperm.xlu1 %1347, %v1155_v63  }
 0x608   : > { %v944_v0 = vpop.xlane.xlu1 %943 }
 0x609   : > { %v949_v1 = vsub.f32 %v933_v54, %v944_v0 }
 0x60a   : > { %v940_v2 = vpop.xlane.xlu0 %939 }
 0x60b   : > { %v947_v5 = vsub.f32 %v925_v56, %v940_v2  ;;  %v955_v8 = vmul.f32 1.442695, %v949_v1 }
 0x60c   : > { %v1704_v6 = vpop.xlane.xlu1 %945 }
 0x60d   : > { %v951_v7 = vmul.f32 1.442695, %v947_v5  ;;  %v950_v21 = vsub.f32 %v936_v58, %v1704_v6 }
 0x60e   : > { %v942_v10 = vpop.xlane.xlu0 %941 }
 0x60f   : > { %1356 = vpow2.f32 %v951_v7  ;;  %v948_v24 = vsub.f32 %v928_v60, %v942_v10  ;;  %v957_v26 = vmul.f32 1.442695, %v950_v21 }
 0x610   : > { %1358 = vpow2.f32 %v955_v8  ;;  %v984_v27 = vpop.permute.xlu1 %983 }
 0x611   : > { %v953_v11 = vmul.f32 1.442695, %v948_v24  ;;  %vm992_vm13 = vcmp.eq.s32.totalorder %v1639_v47, %v984_v27 }
 0x612   : > { %v996_v28 = vsel %vm992_vm13, %v928_v60, 0.0 }
 0x613   : > { %1360 = vpow2.f32 %v953_v11 }
 0x614   : > { %1362 = vpow2.f32 %v957_v26  ;;  %v987_v15 = vpop.permute.xlu1 %986 }
 0x615   : > { %vm993_vm11 = vcmp.eq.s32.totalorder %v1639_v47, %v987_v15 }
 0x616   : > { %v981_v19 = vpop.permute.xlu0 %980  ;;  %v997_v22 = vsel %vm993_vm11, %v933_v54, 0.0 }
 0x617   : > { %vm991_vm12 = vcmp.eq.s32.totalorder %v1639_v47, %v981_v19 }
 0x618   : > { %v995_v23 = vsel %vm991_vm12, %v925_v56, 0.0  ;;  %v990_v25 = vpop.permute.xlu1 %989 }
 0x619   : > { %vm994_vm14 = vcmp.eq.s32.totalorder %v1639_v47, %v990_v25 }
 0x61a   : > { %v998_v29 = vsel %vm994_vm14, %v936_v58, 0.0 }
 0x61c   : > { %v1357_v12 = vpop.eup %1356 }
 0x61d   : > { %959 = vadd.xlane.f32.xlu1 %v1357_v12  ;;  %v1359_v16 = vpop.eup %1358 }
 0x620   : > { %v1361_v18 = vpop.eup %1360 }
 0x621   : > { %963 = vadd.xlane.f32.xlu1 %v1359_v16  ;;  %961 = vadd.xlane.f32.xlu0 %v1361_v18  ;;  %v1363_v20 = vpop.eup %1362 }
 0x625   : > { %965 = vadd.xlane.f32.xlu1 %v1363_v20  ;;  %1003 = vadd.xlane.f32.xlu0 %v997_v22 }
 0x629   : > { %999 = vadd.xlane.f32.xlu1 %v995_v23 }
 0x62d   : > { %1001 = vadd.xlane.f32.xlu1 %v996_v28 }
 0x631   : > { %1005 = vadd.xlane.f32.xlu1 %v998_v29 }
 0x6a6   : > { %v960_v30 = vpop.xlane.xlu1 %959 }
 0x6a7   : > { %1364 = vlog2.f32 %v960_v30 }
 0x6aa   : > { %v964_v31 = vpop.xlane.xlu1 %963  ;;  %v962_v32 = vpop.xlane.xlu0 %961 }
 0x6ab   : > { %1366 = vlog2.f32 %v964_v31 }
 0x6ac   : > { %1368 = vlog2.f32 %v962_v32 }
 0x6ae   : > { %v966_v33 = vpop.xlane.xlu1 %965  ;;  %v1004_v46 = vpop.xlane.xlu0 %1003 }
 0x6af   : > { %1370 = vlog2.f32 %v966_v33 }
 0x6b2   : > { %v1000_v35 = vpop.xlane.xlu1 %999 }
 0x6b4   : > { %v1365_v34 = vpop.eup %1364 }
 0x6b5   : > { %v968_v36 = vmul.f32 0.6931472, %v1365_v34 }
 0x6b6   : > { %v1002_v42 = vpop.xlane.xlu1 %1001 }
 0x6b7   : > { %v975_v37 = vadd.f32 %v968_v36, %v940_v2 }
 0x6b8   : > { %v1367_v38 = vpop.eup %1366 }
 0x6b9   : > { %v1369_v39 = vpop.eup %1368  ;;  %v972_v40 = vmul.f32 0.6931472, %v1367_v38  ;;  %v1007_v47 = vsub.f32 %v975_v37, %v1000_v35 }
 0x6ba   : > { %v970_v41 = vmul.f32 0.6931472, %v1369_v39  ;;  %v1006_v54 = vpop.xlane.xlu1 %1005 }
 0x6bb   : > { %v977_v43 = vadd.f32 %v972_v40, %v944_v0  ;;  %v1011_v44 = vadd.f32 %v1007_v47, %v1646_v3 }
 0x6bc   : > { %v1371_v45 = vpop.eup %1370  ;;  %v976_v48 = vadd.f32 %v970_v41, %v942_v10 }
 0x6bd   : > { %v974_v49 = vmul.f32 0.6931472, %v1371_v45  ;;  %v1009_v50 = vsub.f32 %v977_v43, %v1004_v46  ;;  %1016 = vst.msk [vmem:[%s1607_s13] sm:$0xff] %vm1015_vm15, %v1011_v44 }
 0x6be   : > { %v1008_v4 = vsub.f32 %v976_v48, %v1002_v42 }
 0x6bf   : > { %v1013_v51 = vadd.f32 %v1009_v50, %v1648_v13  ;;  %v978_v52 = vadd.f32 %v974_v49, %v1704_v6 }
 0x6c0   : > { %v1012_v53 = vadd.f32 %v1008_v4, %v1650_v14 }
 0x6c1   : > { %1018 = vst.msk [vmem:[%s1607_s13 + $0x10] sm:$0xff] %vm1015_vm15, %v1013_v51  ;;  %v1010_v55 = vsub.f32 %v978_v52, %v1006_v54 }
 0x6c2   : > { %1017 = vst.msk [vmem:[%s1607_s13 + $0x8] sm:$0xff] %vm1015_vm15, %v1012_v53 }
 0x6c3   : > { %v1014_v3 = vadd.f32 %v1010_v55, %v1653_v17 }
 0x6c5   : > { %1019 = vst.msk [vmem:[%s1607_s13 + $0x18] sm:$0xff] %vm1015_vm15, %v1014_v3 }
 0x6c6 PF: > { %s27_s14 = sadd.s32 1, %s1452_s14  }
 0x6c7   : > { %p24_p3 = scmp.ge.s32.totalorder %s27_s14, 9  }
 0x6c9   :  { %26 = sbr.rel (!%p24_p3) target bundleno = 17 (0x11), region = 106 }
 0x6ce   :  { %1042 = vsyncpa [#allocation5], 1 }
 0x6cf   :  { %1044 = vsyncpa [#allocation5 + $0x1], 1 }
 0x6d0   :  { %1045 = vsyncpa [#allocation7], 1 }

</bundles_post_ra>
